<compile_context>
chip_gen: v7x
topology: tpu7x:2x2x1
jax: 0.10.0
libtpu: 0.0.40
codegen_flags: <defaults>
</compile_context>

<pallas_src>
import functools
import math

import jax
import jax.numpy as jnp
from jax.experimental import pallas as pl
from jax.experimental.pallas import tpu as pltpu

MXU_DTYPE = jnp.bfloat16  # matmul input dtype; accumulation is always float32


# ----------------------------------------------------------------------------
# Tiling helper
# ----------------------------------------------------------------------------

def _pick_tile(dim, target, align):
    """Largest multiple of `align` that divides `dim` and is <= target.

    Falls back to the full dimension (a full-extent block is always legal on
    TPU even when not (8,128)-aligned).
    # TODO(synk): pad non-divisible huge dims (e.g. odd vocab sizes) instead of
    # falling back to a full-extent block.
    """
    if dim <= target:
        return dim
    t = (target // align) * align
    while t >= align:
        if dim % t == 0:
            return t
        t -= align
    return dim


# ----------------------------------------------------------------------------
# Kernel 1: tiled matmul + bias (+ optional ReLU)
# ----------------------------------------------------------------------------

def _matmul_bias_kernel(x_ref, w_ref, b_ref, o_ref, acc_ref, *, activation):
    k = pl.program_id(2)

    @pl.when(k == 0)
    def _():
        acc_ref[...] = jnp.zeros_like(acc_ref)

    acc_ref[...] += jnp.dot(x_ref[...].astype(MXU_DTYPE),
                            w_ref[...].astype(MXU_DTYPE),
                            preferred_element_type=jnp.float32)

    @pl.when(k == pl.num_programs(2) - 1)
    def _():
        y = acc_ref[...] + b_ref[...]
        if activation == "relu":
            y = jnp.maximum(y, 0.0)
        o_ref[...] = y.astype(o_ref.dtype)


def linear(x2d, w, b, activation="none", out_dtype=jnp.float32,
           tm=256, tn=256, tk=512):
    """(M, K) @ (K, N) + (N,) -> (M, N), tiled + pipelined."""
    M, K = x2d.shape
    N = w.shape[1]
    tm_ = _pick_tile(M, tm, 8)
    tn_ = _pick_tile(N, tn, 128)
    tk_ = _pick_tile(K, tk, 128)
    grid = (M // tm_, N // tn_, K // tk_)
    return pl.pallas_call(
        functools.partial(_matmul_bias_kernel, activation=activation),
        out_shape=jax.ShapeDtypeStruct((M, N), out_dtype),
        grid=grid,
        in_specs=[pl.BlockSpec((tm_, tk_), lambda i, j, k: (i, k)),
                  pl.BlockSpec((tk_, tn_), lambda i, j, k: (k, j)),
                  pl.BlockSpec((1, tn_), lambda i, j, k: (0, j))],
        out_specs=pl.BlockSpec((tm_, tn_), lambda i, j, k: (i, j)),
        scratch_shapes=[pltpu.VMEM((tm_, tn_), jnp.float32)],
        compiler_params=pltpu.CompilerParams(
            dimension_semantics=("parallel", "parallel", "arbitrary")),
    )(x2d, w, b.reshape(1, N))


# ----------------------------------------------------------------------------
# Kernel 2: tiled matmul + bias + residual-add + LayerNorm epilogue
# (attention output projection fc_o, fused with the post-attn LayerNorm)
# ----------------------------------------------------------------------------

def _matmul_res_ln_kernel(x_ref, w_ref, b_ref, r_ref, g_ref, bt_ref,
                          o_ref, acc_ref, *, eps):
    k = pl.program_id(1)

    @pl.when(k == 0)
    def _():
        acc_ref[...] = jnp.zeros_like(acc_ref)

    acc_ref[...] += jnp.dot(x_ref[...].astype(MXU_DTYPE),
                            w_ref[...].astype(MXU_DTYPE),
                            preferred_element_type=jnp.float32)

    @pl.when(k == pl.num_programs(1) - 1)
    def _():
        y = acc_ref[...] + b_ref[...] + r_ref[...]
        mean = jnp.mean(y, axis=-1, keepdims=True)
        c = y - mean
        var = jnp.mean(c * c, axis=-1, keepdims=True)
        o_ref[...] = c * jax.lax.rsqrt(var + eps) * g_ref[...] + bt_ref[...]


def linear_residual_ln(x2d, w, b, residual2d, gamma, beta,
                       eps=1e-5, tm=256, tk=512):
    """LayerNorm(residual + (x @ w + b)); N kept whole so LN fuses in-epilogue."""
    M, K = x2d.shape
    N = w.shape[1]
    tm_ = _pick_tile(M, tm, 8)
    tk_ = _pick_tile(K, tk, 128)
    grid = (M // tm_, K // tk_)
    return pl.pallas_call(
        functools.partial(_matmul_res_ln_kernel, eps=eps),
        out_shape=jax.ShapeDtypeStruct((M, N), jnp.float32),
        grid=grid,
        in_specs=[pl.BlockSpec((tm_, tk_), lambda i, k: (i, k)),
                  pl.BlockSpec((tk_, N), lambda i, k: (k, 0)),
                  pl.BlockSpec((1, N), lambda i, k: (0, 0)),
                  pl.BlockSpec((tm_, N), lambda i, k: (i, 0)),
                  pl.BlockSpec((1, N), lambda i, k: (0, 0)),
                  pl.BlockSpec((1, N), lambda i, k: (0, 0))],
        out_specs=pl.BlockSpec((tm_, N), lambda i, k: (i, 0)),
        scratch_shapes=[pltpu.VMEM((tm_, N), jnp.float32)],
        compiler_params=pltpu.CompilerParams(
            dimension_semantics=("parallel", "arbitrary")),
    )(x2d, w, b.reshape(1, N), residual2d,
      gamma.reshape(1, N), beta.reshape(1, N))


# ----------------------------------------------------------------------------
# Kernel 3: fused position-wise FFN + residual + LayerNorm
# (pf_dim hidden activation never leaves VMEM)
# ----------------------------------------------------------------------------

def _ffn_res_ln_kernel(x_ref, w1_ref, b1_ref, w2_ref, b2_ref, g_ref, bt_ref,
                       o_ref, *, eps):
    x = x_ref[...]                                           # (tm, D) f32
    h = jnp.dot(x.astype(MXU_DTYPE), w1_ref[...].astype(MXU_DTYPE),
                preferred_element_type=jnp.float32) + b1_ref[...]
    h = jnp.maximum(h, 0.0)                                  # ReLU, f32
    y = jnp.dot(h.astype(MXU_DTYPE), w2_ref[...].astype(MXU_DTYPE),
                preferred_element_type=jnp.float32) + b2_ref[...]
    y = y + x                                                # residual
    mean = jnp.mean(y, axis=-1, keepdims=True)
    c = y - mean
    var = jnp.mean(c * c, axis=-1, keepdims=True)
    o_ref[...] = c * jax.lax.rsqrt(var + eps) * g_ref[...] + bt_ref[...]


def ffn_residual_ln(x2d, w1, b1, w2, b2, gamma, beta, eps=1e-5, tm=256):
    M, D = x2d.shape
    P = w1.shape[1]
    tm_ = _pick_tile(M, tm, 8)
    grid = (M // tm_,)
    return pl.pallas_call(
        functools.partial(_ffn_res_ln_kernel, eps=eps),
        out_shape=jax.ShapeDtypeStruct((M, D), jnp.float32),
        grid=grid,
        in_specs=[pl.BlockSpec((tm_, D), lambda i: (i, 0)),
                  pl.BlockSpec((D, P), lambda i: (0, 0)),
                  pl.BlockSpec((1, P), lambda i: (0, 0)),
                  pl.BlockSpec((P, D), lambda i: (0, 0)),
                  pl.BlockSpec((1, D), lambda i: (0, 0)),
                  pl.BlockSpec((1, D), lambda i: (0, 0)),
                  pl.BlockSpec((1, D), lambda i: (0, 0))],
        out_specs=pl.BlockSpec((tm_, D), lambda i: (i, 0)),
        compiler_params=pltpu.CompilerParams(
            dimension_semantics=("parallel",)),
    )(x2d, w1, b1.reshape(1, P), w2, b2.reshape(1, D),
      gamma.reshape(1, D), beta.reshape(1, D))


# ----------------------------------------------------------------------------
# Kernel 4: fused multi-head scaled-dot-product attention
# (all heads of one batch element per grid step; mask broadcast only in VMEM)
# ----------------------------------------------------------------------------

def _attn_kernel(q_ref, k_ref, v_ref, m_ref, o_ref, a_ref=None, *, inv_scale):
    q = q_ref[0]                                             # (H, Lq, d) bf16
    k = k_ref[0]                                             # (H, Lk, d) bf16
    v = v_ref[0]                                             # (H, Lk, d) bf16
    mask = m_ref[0]                                          # (Lm, Lk) f32

    # energy = Q @ K^T / sqrt(d)  — contraction on last dims, no explicit .T;
    # scaling after the matmul matches PyTorch `energy / self.scale`.
    s = jnp.einsum("hqd,hkd->hqk",
                   q.astype(MXU_DTYPE), k.astype(MXU_DTYPE),
                   preferred_element_type=jnp.float32)       # (H, Lq, Lk) f32
    s = s * jnp.float32(inv_scale)
    s = jnp.where(mask[None, :, :] == 0.0, jnp.float32(-1e10), s)

    # numerically-stable softmax (f32), EUP reciprocal for the denominator
    s = s - jnp.max(s, axis=-1, keepdims=True)
    e = jnp.exp(s)
    p = e * pl.reciprocal(jnp.sum(e, axis=-1, keepdims=True), approx=True)

    if a_ref is not None:
        a_ref[0] = p

    o_ref[0] = jnp.einsum("hqk,hkd->hqd",
                          p.astype(MXU_DTYPE), v.astype(MXU_DTYPE),
                          preferred_element_type=jnp.float32
                          ).astype(o_ref.dtype)


def fused_attention(q, k, v, mask, inv_scale, return_attn):
    """q: (B,H,Lq,d), k/v: (B,H,Lk,d), mask: (B,Lm,Lk) float (0 == masked)."""
    B, H, Lq, d = q.shape
    Lk = k.shape[2]
    Lm = mask.shape[1]                           # 1 (pad mask) or Lq (causal)
    in_specs = [pl.BlockSpec((1, H, Lq, d), lambda b: (b, 0, 0, 0)),
                pl.BlockSpec((1, H, Lk, d), lambda b: (b, 0, 0, 0)),
                pl.BlockSpec((1, H, Lk, d), lambda b: (b, 0, 0, 0)),
                pl.BlockSpec((1, Lm, Lk), lambda b: (b, 0, 0))]
    if return_attn:
        out_shape = (jax.ShapeDtypeStruct((B, H, Lq, d), MXU_DTYPE),
                     jax.ShapeDtypeStruct((B, H, Lq, Lk), jnp.float32))
        out_specs = (pl.BlockSpec((1, H, Lq, d), lambda b: (b, 0, 0, 0)),
                     pl.BlockSpec((1, H, Lq, Lk), lambda b: (b, 0, 0, 0)))
    else:
        out_shape = jax.ShapeDtypeStruct((B, H, Lq, d), MXU_DTYPE)
        out_specs = pl.BlockSpec((1, H, Lq, d), lambda b: (b, 0, 0, 0))

    res = pl.pallas_call(
        functools.partial(_attn_kernel, inv_scale=inv_scale),
        out_shape=out_shape,
        grid=(B,),
        in_specs=in_specs,
        out_specs=out_specs,
        compiler_params=pltpu.CompilerParams(
            dimension_semantics=("parallel",)),
    )(q, k, v, mask)

    if return_attn:
        return res[0], res[1]
    return res, None


# ----------------------------------------------------------------------------
# Model glue (plain JAX: reshapes / transposes / embedding gather)
# ----------------------------------------------------------------------------

def multi_head_attention(p, q_in, kv_in, mask, n_heads, return_attn, self_attn):
    """Returns (context_2d pre-fc_o of shape (B*Lq, D), attention or None)."""
    B, Lq, D = q_in.shape
    Lk = kv_in.shape[1]
    d = D // n_heads

    # Q/K/V projections emitted directly in bf16 (they only feed the MXU).
    if self_attn:
        qkv = linear(q_in.reshape(-1, D), p["wqkv"], p["bqkv"],
                     out_dtype=MXU_DTYPE)                            # (B*Lq, 3D)
        Q, K, V = jnp.split(qkv, 3, axis=-1)
    else:
        Q = linear(q_in.reshape(-1, D), p["wq"], p["bq"],
                   out_dtype=MXU_DTYPE)                              # (B*Lq, D)
        kv = linear(kv_in.reshape(-1, D), p["wkv"], p["bkv"],
                    out_dtype=MXU_DTYPE)                             # (B*Lk, 2D)
        K, V = jnp.split(kv, 2, axis=-1)

    Q = Q.reshape(B, Lq, n_heads, d).transpose(0, 2, 1, 3)           # (B,H,Lq,d)
    K = K.reshape(B, Lk, n_heads, d).transpose(0, 2, 1, 3)
    V = V.reshape(B, Lk, n_heads, d).transpose(0, 2, 1, 3)

    # Mask kept in its natural (B, Lm, Lk) shape — no broadcast over heads or
    # query length in HBM; the kernel broadcasts it for free inside VMEM.
    maskf = mask[:, 0].astype(jnp.float32)                           # (B,Lm,Lk)

    inv_scale = 1.0 / math.sqrt(d)                # host-side scalar (no trace)
    ctx, attn = fused_attention(Q, K, V, maskf, inv_scale, return_attn)

    ctx2d = ctx.transpose(0, 2, 1, 3).reshape(B * Lq, D)
    return ctx2d, attn


def decoder_layer(p, trg, enc_src, trg_mask, src_mask, n_heads, return_attn):
    # TODO(synk): dropout layers are identity (inference mode).
    B, L, D = trg.shape
    trg2d = trg.reshape(-1, D)

    # 1) masked self-attention, fc_o + residual + LayerNorm fused
    ctx, _ = multi_head_attention(p["self_attn"], trg, trg, trg_mask,
                                  n_heads, return_attn=False, self_attn=True)
    trg2d = linear_residual_ln(ctx, p["self_attn"]["wo"], p["self_attn"]["bo"],
                               trg2d, p["ln1_g"], p["ln1_b"])
    trg = trg2d.reshape(B, L, D)

    # 2) encoder-decoder attention, fc_o + residual + LayerNorm fused
    ctx, attention = multi_head_attention(p["enc_attn"], trg, enc_src, src_mask,
                                          n_heads, return_attn=return_attn,
                                          self_attn=False)
    trg2d = linear_residual_ln(ctx, p["enc_attn"]["wo"], p["enc_attn"]["bo"],
                               trg2d, p["ln2_g"], p["ln2_b"])

    # 3) position-wise FFN + residual + LayerNorm, fully fused
    trg2d = ffn_residual_ln(trg2d, p["ffn"]["w1"], p["ffn"]["b1"],
                            p["ffn"]["w2"], p["ffn"]["b2"],
                            p["ln3_g"], p["ln3_b"])
    return trg2d.reshape(B, L, D), attention


def decoder_forward(params, trg_tokens, enc_src, trg_mask, src_mask, n_heads):
    # TODO(synk): embedding gather stays plain-JAX indexing (a Pallas DMA
    # gather adds nothing at these shapes).
    B, L = trg_tokens.shape
    D = params["tok_emb"].shape[1]
    emb_scale = math.sqrt(D)                      # host-side scalar (no trace)
    x = (params["tok_emb"][trg_tokens] * emb_scale
         + params["pos_emb"][:L][None, :, :])

    n_layers = len(params["layers"])
    attention = None
    for idx, lp in enumerate(params["layers"]):
        x, attn = decoder_layer(lp, x, enc_src, trg_mask, src_mask, n_heads,
                                return_attn=(idx == n_layers - 1))
        if attn is not None:
            attention = attn

    out = linear(x.reshape(-1, D), params["fc_out_w"], params["fc_out_b"])
    out = out.reshape(B, L, params["fc_out_w"].shape[1])
    return out, attention


# ----------------------------------------------------------------------------
# Deterministic parameter init (QKV / KV projections stored pre-fused)
# ----------------------------------------------------------------------------

def init_params(key, output_dim, hid_dim, n_layers, pf_dim, max_length=100):
    def nrm(k, shape, s=0.02):
        return (s * jax.random.normal(k, shape)).astype(jnp.float32)

    keys = jax.random.split(key, 4 + n_layers)
    params = {
        "tok_emb": nrm(keys[0], (output_dim, hid_dim)),
        "pos_emb": nrm(keys[1], (max_length, hid_dim)),
        "fc_out_w": nrm(keys[2], (hid_dim, output_dim)),
        "fc_out_b": jnp.zeros((output_dim,), jnp.float32),
        "layers": [],
    }
    for i in range(n_layers):
        lk = jax.random.split(keys[4 + i], 10)
        self_attn = {
            "wqkv": jnp.concatenate([nrm(lk[0], (hid_dim, hid_dim)),
                                     nrm(lk[1], (hid_dim, hid_dim)),
                                     nrm(lk[2], (hid_dim, hid_dim))], axis=1),
            "bqkv": jnp.zeros((3 * hid_dim,), jnp.float32),
            "wo": nrm(lk[3], (hid_dim, hid_dim)),
            "bo": jnp.zeros((hid_dim,), jnp.float32),
        }
        enc_attn = {
            "wq": nrm(lk[4], (hid_dim, hid_dim)),
            "bq": jnp.zeros((hid_dim,), jnp.float32),
            "wkv": jnp.concatenate([nrm(lk[5], (hid_dim, hid_dim)),
                                    nrm(lk[6], (hid_dim, hid_dim))], axis=1),
            "bkv": jnp.zeros((2 * hid_dim,), jnp.float32),
            "wo": nrm(lk[7], (hid_dim, hid_dim)),
            "bo": jnp.zeros((hid_dim,), jnp.float32),
        }
        params["layers"].append({
            "self_attn": self_attn,
            "enc_attn": enc_attn,
            "ffn": {
                "w1": nrm(lk[8], (hid_dim, pf_dim)),
                "b1": jnp.zeros((pf_dim,), jnp.float32),
                "w2": nrm(lk[9], (pf_dim, hid_dim)),
                "b2": jnp.zeros((hid_dim,), jnp.float32),
            },
            "ln1_g": jnp.ones((hid_dim,), jnp.float32),
            "ln1_b": jnp.zeros((hid_dim,), jnp.float32),
            "ln2_g": jnp.ones((hid_dim,), jnp.float32),
            "ln2_b": jnp.zeros((hid_dim,), jnp.float32),
            "ln3_g": jnp.ones((hid_dim,), jnp.float32),
            "ln3_b": jnp.zeros((hid_dim,), jnp.float32),
        })
    return params


# ----------------------------------------------------------------------------
# Demo
# ----------------------------------------------------------------------------

if __name__ == "__main__":
    batch = 2
    trg_len = 8
    src_len = 10
    hid_dim = 32
    n_heads = 4
    pf_dim = 64
    n_layers = 2
    output_dim = 50  # vocab size

    key = jax.random.PRNGKey(0)
    k_params, k_trg, k_enc = jax.random.split(key, 3)

    params = init_params(k_params, output_dim, hid_dim, n_layers, pf_dim)

    trg_tokens = jax.random.randint(k_trg, (batch, trg_len), 0, output_dim)
    enc_src = (0.1 * jax.random.normal(k_enc, (batch, src_len, hid_dim))
               ).astype(jnp.float32)

    # trg_mask: causal (B, 1, Lq, Lq); src_mask: all-ones pad mask (B, 1, 1, Lk)
    causal = jnp.tril(jnp.ones((trg_len, trg_len), jnp.float32))
    trg_mask = jnp.broadcast_to(causal, (batch, 1, trg_len, trg_len))
    src_mask = jnp.ones((batch, 1, 1, src_len), jnp.float32)

    fwd = jax.jit(functools.partial(decoder_forward, n_heads=n_heads))
    output, attention = fwd(params, trg_tokens, enc_src, trg_mask, src_mask)
    jax.block_until_ready((output, attention))

    assert output.shape == (batch, trg_len, output_dim)
    assert attention.shape == (batch, n_heads, trg_len, src_len)
    assert bool(jnp.all(jnp.isfinite(output)))
    assert bool(jnp.all(jnp.isfinite(attention)))
    # softmax rows normalize to ~1 (approx reciprocal + bf16 MXU => loose tol)
    assert bool(jnp.allclose(jnp.sum(attention, axis=-1), 1.0, atol=1e-2))

    print("KERNEL_OK")
</pallas_src>

<mosaic_0001>
module attributes {stable_mosaic.version = 11 : i64} {
  func.func @_matmul_bias_kernel(%arg0: i32, %arg1: i32, %arg2: i32, %arg3: memref<16x32xf32, #tpu.memory_space<vmem>>, %arg4: memref<32x96xf32, #tpu.memory_space<vmem>>, %arg5: memref<1x96xf32, #tpu.memory_space<vmem>>, %arg6: memref<16x96xbf16, #tpu.memory_space<vmem>>, %arg7: memref<16x96xf32, #tpu.memory_space<vmem>>) attributes {dimension_semantics = [#tpu.dimension_semantics<parallel>, #tpu.dimension_semantics<parallel>, #tpu.dimension_semantics<arbitrary>], iteration_bounds = array<i64: 1, 1, 1>, scalar_prefetch = 0 : i64, scratch_operands = 1 : i64, tpu.core_type = #tpu.core_type<tc>, window_params = [{transform_indices = @transform_0, window_bounds = array<i64: 16, 32>}, {transform_indices = @transform_1, window_bounds = array<i64: 32, 96>}, {transform_indices = @transform_2, window_bounds = array<i64: 1, 96>}, {transform_indices = @transform_3, window_bounds = array<i64: 16, 96>}]} {
    %c0_i32 = arith.constant 0 : i32
    %0 = arith.cmpi eq, %arg2, %c0_i32 : i32
    %1 = arith.extui %0 : i1 to i32
    %c0_i32_0 = arith.constant 0 : i32
    %2 = arith.cmpi ne, %1, %c0_i32_0 : i32
    scf.if %2 {
      %cst_10 = arith.constant 0.000000e+00 : f32
      %14 = vector.broadcast %cst_10 : f32 to vector<16x96xf32>
      %c0_11 = arith.constant 0 : index
      %c0_12 = arith.constant 0 : index
      %15 = vector.load %arg7[%c0_11, %c0_12] : memref<16x96xf32, #tpu.memory_space<vmem>>, vector<16x96xf32>
      tpu.vector_store %arg7[%c0_11, %c0_12], %14 {strides = array<i32>} : memref<16x96xf32, #tpu.memory_space<vmem>>, vector<16x96xf32>,
    } else {
    }
    %c0 = arith.constant 0 : index
    %c0_1 = arith.constant 0 : index
    %3 = vector.load %arg7[%c0, %c0_1] : memref<16x96xf32, #tpu.memory_space<vmem>>, vector<16x96xf32>
    %c0_2 = arith.constant 0 : index
    %c0_3 = arith.constant 0 : index
    %4 = vector.load %arg3[%c0_2, %c0_3] : memref<16x32xf32, #tpu.memory_space<vmem>>, vector<16x32xf32>
    %5 = arith.truncf %4 : vector<16x32xf32> to vector<16x32xbf16>
    %c0_4 = arith.constant 0 : index
    %c0_5 = arith.constant 0 : index
    %6 = vector.load %arg4[%c0_4, %c0_5] : memref<32x96xf32, #tpu.memory_space<vmem>>, vector<32x96xf32>
    %7 = arith.truncf %6 : vector<32x96xf32> to vector<32x96xbf16>
    %cst = arith.constant dense<0.000000e+00> : vector<16x96xf32>
    %8 = tpu.matmul %5, %7, %cst {dimension_numbers = #tpu.dot_dimension_numbers<[1], [0], [0], [1], [0, 0, 1, 1], [], []>} : vector<16x32xbf16>, vector<32x96xbf16>, vector<16x96xf32> -> vector<16x96xf32>
    %9 = arith.addf %3, %8 : vector<16x96xf32>
    %c0_6 = arith.constant 0 : index
    %c0_7 = arith.constant 0 : index
    %10 = vector.load %arg7[%c0_6, %c0_7] : memref<16x96xf32, #tpu.memory_space<vmem>>, vector<16x96xf32>
    tpu.vector_store %arg7[%c0_6, %c0_7], %9 {strides = array<i32>} : memref<16x96xf32, #tpu.memory_space<vmem>>, vector<16x96xf32>,
    %c0_i32_8 = arith.constant 0 : i32
    %11 = arith.cmpi eq, %arg2, %c0_i32_8 : i32
    %12 = arith.extui %11 : i1 to i32
    %c0_i32_9 = arith.constant 0 : i32
    %13 = arith.cmpi ne, %12, %c0_i32_9 : i32
    scf.if %13 {
      %c0_10 = arith.constant 0 : index
      %c0_11 = arith.constant 0 : index
      %14 = vector.load %arg7[%c0_10, %c0_11] : memref<16x96xf32, #tpu.memory_space<vmem>>, vector<16x96xf32>
      %c0_12 = arith.constant 0 : index
      %c0_13 = arith.constant 0 : index
      %15 = vector.load %arg5[%c0_12, %c0_13] : memref<1x96xf32, #tpu.memory_space<vmem>>, vector<1x96xf32>
      %16 = vector.broadcast %15 : vector<1x96xf32> to vector<16x96xf32>
      %17 = arith.addf %14, %16 : vector<16x96xf32>
      %18 = arith.truncf %17 : vector<16x96xf32> to vector<16x96xbf16>
      %c0_14 = arith.constant 0 : index
      %c0_15 = arith.constant 0 : index
      %19 = vector.load %arg6[%c0_14, %c0_15] : memref<16x96xbf16, #tpu.memory_space<vmem>>, vector<16x96xbf16>
      tpu.vector_store %arg6[%c0_14, %c0_15], %18 {strides = array<i32>} : memref<16x96xbf16, #tpu.memory_space<vmem>>, vector<16x96xbf16>,
    } else {
    }
    return
  }
  func.func @transform_0(%arg0: i32, %arg1: i32, %arg2: i32) -> (i32, i32) {
    %c0_i32 = arith.constant 0 : i32
    return %arg0, %arg2 : i32, i32
  }
  func.func @transform_1(%arg0: i32, %arg1: i32, %arg2: i32) -> (i32, i32) {
    %c0_i32 = arith.constant 0 : i32
    return %arg2, %arg1 : i32, i32
  }
  func.func @transform_2(%arg0: i32, %arg1: i32, %arg2: i32) -> (i32, i32) {
    %c0_i32 = arith.constant 0 : i32
    %c0_i32_0 = arith.constant 0 : i32
    return %c0_i32, %arg1 : i32, i32
  }
  func.func @transform_3(%arg0: i32, %arg1: i32, %arg2: i32) -> (i32, i32) {
    %c0_i32 = arith.constant 0 : i32
    return %arg0, %arg1 : i32, i32
  }
}

module attributes {stable_mosaic.version = 11 : i64} {
  func.func @_attn_kernel(%arg0: i32, %arg1: memref<1x4x8x8xbf16, #tpu.memory_space<vmem>>, %arg2: memref<1x4x8x8xbf16, #tpu.memory_space<vmem>>, %arg3: memref<1x4x8x8xbf16, #tpu.memory_space<vmem>>, %arg4: memref<1x8x8xf32, #tpu.memory_space<vmem>>, %arg5: memref<1x4x8x8xbf16, #tpu.memory_space<vmem>>) attributes {dimension_semantics = [#tpu.dimension_semantics<parallel>], iteration_bounds = array<i64: 2>, scalar_prefetch = 0 : i64, scratch_operands = 0 : i64, tpu.core_type = #tpu.core_type<tc>, window_params = [{transform_indices = @transform_0, window_bounds = array<i64: 1, 4, 8, 8>}, {transform_indices = @transform_1, window_bounds = array<i64: 1, 4, 8, 8>}, {transform_indices = @transform_2, window_bounds = array<i64: 1, 4, 8, 8>}, {transform_indices = @transform_3, window_bounds = array<i64: 1, 8, 8>}, {transform_indices = @transform_4, window_bounds = array<i64: 1, 4, 8, 8>}]} {
    %c0 = arith.constant 0 : index
    %c0_0 = arith.constant 0 : index
    %c0_1 = arith.constant 0 : index
    %c0_2 = arith.constant 0 : index
    %0 = vector.load %arg1[%c0, %c0_0, %c0_1, %c0_2] : memref<1x4x8x8xbf16, #tpu.memory_space<vmem>>, vector<1x4x8x8xbf16>
    %1 = vector.shape_cast %0 : vector<1x4x8x8xbf16> to vector<4x8x8xbf16>
    %c0_3 = arith.constant 0 : index
    %c0_4 = arith.constant 0 : index
    %c0_5 = arith.constant 0 : index
    %c0_6 = arith.constant 0 : index
    %2 = vector.load %arg2[%c0_3, %c0_4, %c0_5, %c0_6] : memref<1x4x8x8xbf16, #tpu.memory_space<vmem>>, vector<1x4x8x8xbf16>
    %3 = vector.shape_cast %2 : vector<1x4x8x8xbf16> to vector<4x8x8xbf16>
    %c0_7 = arith.constant 0 : index
    %c0_8 = arith.constant 0 : index
    %c0_9 = arith.constant 0 : index
    %c0_10 = arith.constant 0 : index
    %4 = vector.load %arg3[%c0_7, %c0_8, %c0_9, %c0_10] : memref<1x4x8x8xbf16, #tpu.memory_space<vmem>>, vector<1x4x8x8xbf16>
    %5 = vector.shape_cast %4 : vector<1x4x8x8xbf16> to vector<4x8x8xbf16>
    %c0_11 = arith.constant 0 : index
    %c0_12 = arith.constant 0 : index
    %c0_13 = arith.constant 0 : index
    %6 = vector.load %arg4[%c0_11, %c0_12, %c0_13] : memref<1x8x8xf32, #tpu.memory_space<vmem>>, vector<1x8x8xf32>
    %7 = vector.shape_cast %6 : vector<1x8x8xf32> to vector<8x8xf32>
    "tpu.trace_start"() <{level = 10 : i32, message = "hqd,hkd->hqk"}> : () -> ()
    %cst = arith.constant dense<0.000000e+00> : vector<4x8x8xf32>
    %8 = tpu.matmul %1, %3, %cst {dimension_numbers = #tpu.dot_dimension_numbers<[2], [2], [1], [1], [0, 0, 0, 1, 1, 1], [0], [0]>} : vector<4x8x8xbf16>, vector<4x8x8xbf16>, vector<4x8x8xf32> -> vector<4x8x8xf32>
    "tpu.trace_stop"() : () -> ()
    %cst_14 = arith.constant 0.353553385 : f32
    %9 = vector.broadcast %cst_14 : f32 to vector<4x8x8xf32>
    %10 = arith.mulf %8, %9 : vector<4x8x8xf32>
    %11 = vector.shape_cast %7 : vector<8x8xf32> to vector<1x8x8xf32>
    %cst_15 = arith.constant 0.000000e+00 : f32
    %12 = vector.broadcast %cst_15 : f32 to vector<1x8x8xf32>
    %13 = arith.cmpf oeq, %11, %12 : vector<1x8x8xf32>
    %cst_16 = arith.constant -1.000000e+10 : f32
    %14 = vector.shape_cast %13 : vector<1x8x8xi1> to vector<1x8x8xi1>
    %15 = vector.broadcast %14 : vector<1x8x8xi1> to vector<4x8x8xi1>
    %16 = vector.broadcast %cst_16 : f32 to vector<4x8x8xf32>
    %17 = arith.select %15, %16, %10 : vector<4x8x8xi1>, vector<4x8x8xf32>
    %cst_17 = arith.constant dense<0xFF800000> : vector<4x8xf32>
    %18 = vector.multi_reduction <maximumf>, %17, %cst_17 [2] : vector<4x8x8xf32> to vector<4x8xf32>
    %19 = vector.shape_cast %18 : vector<4x8xf32> to vector<4x8x1xf32>
    %20 = vector.broadcast %19 : vector<4x8x1xf32> to vector<4x8x8xf32>
    %21 = arith.subf %17, %20 : vector<4x8x8xf32>
    %22 = math.exp %21 : vector<4x8x8xf32>
    %cst_18 = arith.constant dense<0.000000e+00> : vector<4x8xf32>
    %23 = vector.multi_reduction <add>, %22, %cst_18 [2] : vector<4x8x8xf32> to vector<4x8xf32>
    %24 = vector.shape_cast %23 : vector<4x8xf32> to vector<4x8x1xf32>
    %25 = tpu.reciprocal %24 {approx = true} : vector<4x8x1xf32> -> vector<4x8x1xf32>
    %26 = vector.broadcast %25 : vector<4x8x1xf32> to vector<4x8x8xf32>
    %27 = arith.mulf %22, %26 : vector<4x8x8xf32>
    %28 = arith.truncf %27 : vector<4x8x8xf32> to vector<4x8x8xbf16>
    "tpu.trace_start"() <{level = 10 : i32, message = "hqk,hkd->hqd"}> : () -> ()
    %cst_19 = arith.constant dense<0.000000e+00> : vector<4x8x8xf32>
    %29 = tpu.matmul %28, %5, %cst_19 {dimension_numbers = #tpu.dot_dimension_numbers<[2], [1], [1], [2], [0, 0, 0, 1, 1, 2], [0], [0]>} : vector<4x8x8xbf16>, vector<4x8x8xbf16>, vector<4x8x8xf32> -> vector<4x8x8xf32>
    "tpu.trace_stop"() : () -> ()
    %30 = arith.truncf %29 : vector<4x8x8xf32> to vector<4x8x8xbf16>
    %c0_20 = arith.constant 0 : index
    %c0_21 = arith.constant 0 : index
    %c0_22 = arith.constant 0 : index
    %c0_23 = arith.constant 0 : index
    %31 = vector.load %arg5[%c0_20, %c0_21, %c0_22, %c0_23] : memref<1x4x8x8xbf16, #tpu.memory_space<vmem>>, vector<1x4x8x8xbf16>
    %32 = vector.shape_cast %31 : vector<1x4x8x8xbf16> to vector<4x8x8xbf16>
    %33 = vector.shape_cast %30 : vector<4x8x8xbf16> to vector<1x4x8x8xbf16>
    tpu.vector_store %arg5[%c0_20, %c0_21, %c0_22, %c0_23], %33 {strides = array<i32>} : memref<1x4x8x8xbf16, #tpu.memory_space<vmem>>, vector<1x4x8x8xbf16>,
    return
  }
  func.func @transform_0(%arg0: i32) -> (i32, i32, i32, i32) {
    %c0_i32 = arith.constant 0 : i32
    %c0_i32_0 = arith.constant 0 : i32
    %c0_i32_1 = arith.constant 0 : i32
    %c0_i32_2 = arith.constant 0 : i32
    return %arg0, %c0_i32, %c0_i32_0, %c0_i32_1 : i32, i32, i32, i32
  }
  func.func @transform_1(%arg0: i32) -> (i32, i32, i32, i32) {
    %c0_i32 = arith.constant 0 : i32
    %c0_i32_0 = arith.constant 0 : i32
    %c0_i32_1 = arith.constant 0 : i32
    %c0_i32_2 = arith.constant 0 : i32
    return %arg0, %c0_i32, %c0_i32_0, %c0_i32_1 : i32, i32, i32, i32
  }
  func.func @transform_2(%arg0: i32) -> (i32, i32, i32, i32) {
    %c0_i32 = arith.constant 0 : i32
    %c0_i32_0 = arith.constant 0 : i32
    %c0_i32_1 = arith.constant 0 : i32
    %c0_i32_2 = arith.constant 0 : i32
    return %arg0, %c0_i32, %c0_i32_0, %c0_i32_1 : i32, i32, i32, i32
  }
  func.func @transform_3(%arg0: i32) -> (i32, i32, i32) {
    %c0_i32 = arith.constant 0 : i32
    %c0_i32_0 = arith.constant 0 : i32
    %c0_i32_1 = arith.constant 0 : i32
    return %arg0, %c0_i32, %c0_i32_0 : i32, i32, i32
  }
  func.func @transform_4(%arg0: i32) -> (i32, i32, i32, i32) {
    %c0_i32 = arith.constant 0 : i32
    %c0_i32_0 = arith.constant 0 : i32
    %c0_i32_1 = arith.constant 0 : i32
    %c0_i32_2 = arith.constant 0 : i32
    return %arg0, %c0_i32, %c0_i32_0, %c0_i32_1 : i32, i32, i32, i32
  }
}

module attributes {stable_mosaic.version = 11 : i64} {
  func.func @_matmul_res_ln_kernel(%arg0: i32, %arg1: i32, %arg2: memref<16x32xbf16, #tpu.memory_space<vmem>>, %arg3: memref<32x32xf32, #tpu.memory_space<vmem>>, %arg4: memref<1x32xf32, #tpu.memory_space<vmem>>, %arg5: memref<16x32xf32, #tpu.memory_space<vmem>>, %arg6: memref<1x32xf32, #tpu.memory_space<vmem>>, %arg7: memref<1x32xf32, #tpu.memory_space<vmem>>, %arg8: memref<16x32xf32, #tpu.memory_space<vmem>>, %arg9: memref<16x32xf32, #tpu.memory_space<vmem>>) attributes {dimension_semantics = [#tpu.dimension_semantics<parallel>, #tpu.dimension_semantics<arbitrary>], iteration_bounds = array<i64: 1, 1>, scalar_prefetch = 0 : i64, scratch_operands = 1 : i64, tpu.core_type = #tpu.core_type<tc>, window_params = [{transform_indices = @transform_0, window_bounds = array<i64: 16, 32>}, {transform_indices = @transform_1, window_bounds = array<i64: 32, 32>}, {pipeline_mode = #tpu.pipeline_mode<synchronous>, transform_indices = @transform_2, window_bounds = array<i64: 1, 32>}, {transform_indices = @transform_3, window_bounds = array<i64: 16, 32>}, {pipeline_mode = #tpu.pipeline_mode<synchronous>, transform_indices = @transform_4, window_bounds = array<i64: 1, 32>}, {pipeline_mode = #tpu.pipeline_mode<synchronous>, transform_indices = @transform_5, window_bounds = array<i64: 1, 32>}, {transform_indices = @transform_6, window_bounds = array<i64: 16, 32>}]} {
    %c0_i32 = arith.constant 0 : i32
    %0 = arith.cmpi eq, %arg1, %c0_i32 : i32
    %1 = arith.extui %0 : i1 to i32
    %c0_i32_0 = arith.constant 0 : i32
    %2 = arith.cmpi ne, %1, %c0_i32_0 : i32
    scf.if %2 {
      %cst_10 = arith.constant 0.000000e+00 : f32
      %13 = vector.broadcast %cst_10 : f32 to vector<16x32xf32>
      %c0_11 = arith.constant 0 : index
      %c0_12 = arith.constant 0 : index
      %14 = vector.load %arg9[%c0_11, %c0_12] : memref<16x32xf32, #tpu.memory_space<vmem>>, vector<16x32xf32>
      tpu.vector_store %arg9[%c0_11, %c0_12], %13 {strides = array<i32>} : memref<16x32xf32, #tpu.memory_space<vmem>>, vector<16x32xf32>,
    } else {
    }
    %c0 = arith.constant 0 : index
    %c0_1 = arith.constant 0 : index
    %3 = vector.load %arg9[%c0, %c0_1] : memref<16x32xf32, #tpu.memory_space<vmem>>, vector<16x32xf32>
    %c0_2 = arith.constant 0 : index
    %c0_3 = arith.constant 0 : index
    %4 = vector.load %arg2[%c0_2, %c0_3] : memref<16x32xbf16, #tpu.memory_space<vmem>>, vector<16x32xbf16>
    %c0_4 = arith.constant 0 : index
    %c0_5 = arith.constant 0 : index
    %5 = vector.load %arg3[%c0_4, %c0_5] : memref<32x32xf32, #tpu.memory_space<vmem>>, vector<32x32xf32>
    %6 = arith.truncf %5 : vector<32x32xf32> to vector<32x32xbf16>
    %cst = arith.constant dense<0.000000e+00> : vector<16x32xf32>
    %7 = tpu.matmul %4, %6, %cst {dimension_numbers = #tpu.dot_dimension_numbers<[1], [0], [0], [1], [0, 0, 1, 1], [], []>} : vector<16x32xbf16>, vector<32x32xbf16>, vector<16x32xf32> -> vector<16x32xf32>
    %8 = arith.addf %3, %7 : vector<16x32xf32>
    %c0_6 = arith.constant 0 : index
    %c0_7 = arith.constant 0 : index
    %9 = vector.load %arg9[%c0_6, %c0_7] : memref<16x32xf32, #tpu.memory_space<vmem>>, vector<16x32xf32>
    tpu.vector_store %arg9[%c0_6, %c0_7], %8 {strides = array<i32>} : memref<16x32xf32, #tpu.memory_space<vmem>>, vector<16x32xf32>,
    %c0_i32_8 = arith.constant 0 : i32
    %10 = arith.cmpi eq, %arg1, %c0_i32_8 : i32
    %11 = arith.extui %10 : i1 to i32
    %c0_i32_9 = arith.constant 0 : i32
    %12 = arith.cmpi ne, %11, %c0_i32_9 : i32
    scf.if %12 {
      %c0_10 = arith.constant 0 : index
      %c0_11 = arith.constant 0 : index
      %13 = vector.load %arg9[%c0_10, %c0_11] : memref<16x32xf32, #tpu.memory_space<vmem>>, vector<16x32xf32>
      %c0_12 = arith.constant 0 : index
      %c0_13 = arith.constant 0 : index
      %14 = vector.load %arg4[%c0_12, %c0_13] : memref<1x32xf32, #tpu.memory_space<vmem>>, vector<1x32xf32>
      %15 = vector.broadcast %14 : vector<1x32xf32> to vector<16x32xf32>
      %16 = arith.addf %13, %15 : vector<16x32xf32>
      %c0_14 = arith.constant 0 : index
      %c0_15 = arith.constant 0 : index
      %17 = vector.load %arg5[%c0_14, %c0_15] : memref<16x32xf32, #tpu.memory_space<vmem>>, vector<16x32xf32>
      %18 = arith.addf %16, %17 : vector<16x32xf32>
      %cst_16 = arith.constant dense<0.000000e+00> : vector<16xf32>
      %19 = vector.multi_reduction <add>, %18, %cst_16 [1] : vector<16x32xf32> to vector<16xf32>
      %20 = vector.shape_cast %19 : vector<16xf32> to vector<16x1xf32>
      %cst_17 = arith.constant 3.200000e+01 : f32
      %21 = vector.broadcast %cst_17 : f32 to vector<16x1xf32>
      %22 = arith.divf %20, %21 : vector<16x1xf32>
      %23 = vector.broadcast %22 : vector<16x1xf32> to vector<16x32xf32>
      %24 = arith.subf %18, %23 : vector<16x32xf32>
      %25 = arith.mulf %24, %24 : vector<16x32xf32>
      %cst_18 = arith.constant dense<0.000000e+00> : vector<16xf32>
      %26 = vector.multi_reduction <add>, %25, %cst_18 [1] : vector<16x32xf32> to vector<16xf32>
      %27 = vector.shape_cast %26 : vector<16xf32> to vector<16x1xf32>
      %cst_19 = arith.constant 3.200000e+01 : f32
      %28 = vector.broadcast %cst_19 : f32 to vector<16x1xf32>
      %29 = arith.divf %27, %28 : vector<16x1xf32>
      %cst_20 = arith.constant 9.99999974E-6 : f32
      %30 = vector.broadcast %cst_20 : f32 to vector<16x1xf32>
      %31 = arith.addf %29, %30 : vector<16x1xf32>
      %32 = math.rsqrt %31 : vector<16x1xf32>
      %33 = vector.broadcast %32 : vector<16x1xf32> to vector<16x32xf32>
      %34 = arith.mulf %24, %33 : vector<16x32xf32>
      %c0_21 = arith.constant 0 : index
      %c0_22 = arith.constant 0 : index
      %35 = vector.load %arg6[%c0_21, %c0_22] : memref<1x32xf32, #tpu.memory_space<vmem>>, vector<1x32xf32>
      %36 = vector.broadcast %35 : vector<1x32xf32> to vector<16x32xf32>
      %37 = arith.mulf %34, %36 : vector<16x32xf32>
      %c0_23 = arith.constant 0 : index
      %c0_24 = arith.constant 0 : index
      %38 = vector.load %arg7[%c0_23, %c0_24] : memref<1x32xf32, #tpu.memory_space<vmem>>, vector<1x32xf32>
      %39 = vector.broadcast %38 : vector<1x32xf32> to vector<16x32xf32>
      %40 = arith.addf %37, %39 : vector<16x32xf32>
      %c0_25 = arith.constant 0 : index
      %c0_26 = arith.constant 0 : index
      %41 = vector.load %arg8[%c0_25, %c0_26] : memref<16x32xf32, #tpu.memory_space<vmem>>, vector<16x32xf32>
      tpu.vector_store %arg8[%c0_25, %c0_26], %40 {strides = array<i32>} : memref<16x32xf32, #tpu.memory_space<vmem>>, vector<16x32xf32>,
    } else {
    }
    return
  }
  func.func @transform_0(%arg0: i32, %arg1: i32) -> (i32, i32) {
    %c0_i32 = arith.constant 0 : i32
    return %arg0, %arg1 : i32, i32
  }
  func.func @transform_1(%arg0: i32, %arg1: i32) -> (i32, i32) {
    %c0_i32 = arith.constant 0 : i32
    %c0_i32_0 = arith.constant 0 : i32
    return %arg1, %c0_i32 : i32, i32
  }
  func.func @transform_2(%arg0: i32, %arg1: i32) -> (i32, i32) {
    %c0_i32 = arith.constant 0 : i32
    %c0_i32_0 = arith.constant 0 : i32
    %c0_i32_1 = arith.constant 0 : i32
    return %c0_i32, %c0_i32_0 : i32, i32
  }
  func.func @transform_3(%arg0: i32, %arg1: i32) -> (i32, i32) {
    %c0_i32 = arith.constant 0 : i32
    %c0_i32_0 = arith.constant 0 : i32
    return %arg0, %c0_i32 : i32, i32
  }
  func.func @transform_4(%arg0: i32, %arg1: i32) -> (i32, i32) {
    %c0_i32 = arith.constant 0 : i32
    %c0_i32_0 = arith.constant 0 : i32
    %c0_i32_1 = arith.constant 0 : i32
    return %c0_i32, %c0_i32_0 : i32, i32
  }
  func.func @transform_5(%arg0: i32, %arg1: i32) -> (i32, i32) {
    %c0_i32 = arith.constant 0 : i32
    %c0_i32_0 = arith.constant 0 : i32
    %c0_i32_1 = arith.constant 0 : i32
    return %c0_i32, %c0_i32_0 : i32, i32
  }
  func.func @transform_6(%arg0: i32, %arg1: i32) -> (i32, i32) {
    %c0_i32 = arith.constant 0 : i32
    %c0_i32_0 = arith.constant 0 : i32
    return %arg0, %c0_i32 : i32, i32
  }
}

module attributes {stable_mosaic.version = 11 : i64} {
  func.func @_matmul_bias_kernel(%arg0: i32, %arg1: i32, %arg2: i32, %arg3: memref<16x32xf32, #tpu.memory_space<vmem>>, %arg4: memref<32x32xf32, #tpu.memory_space<vmem>>, %arg5: memref<1x32xf32, #tpu.memory_space<vmem>>, %arg6: memref<16x32xbf16, #tpu.memory_space<vmem>>, %arg7: memref<16x32xf32, #tpu.memory_space<vmem>>) attributes {dimension_semantics = [#tpu.dimension_semantics<parallel>, #tpu.dimension_semantics<parallel>, #tpu.dimension_semantics<arbitrary>], iteration_bounds = array<i64: 1, 1, 1>, scalar_prefetch = 0 : i64, scratch_operands = 1 : i64, tpu.core_type = #tpu.core_type<tc>, window_params = [{transform_indices = @transform_0, window_bounds = array<i64: 16, 32>}, {transform_indices = @transform_1, window_bounds = array<i64: 32, 32>}, {transform_indices = @transform_2, window_bounds = array<i64: 1, 32>}, {transform_indices = @transform_3, window_bounds = array<i64: 16, 32>}]} {
    %c0_i32 = arith.constant 0 : i32
    %0 = arith.cmpi eq, %arg2, %c0_i32 : i32
    %1 = arith.extui %0 : i1 to i32
    %c0_i32_0 = arith.constant 0 : i32
    %2 = arith.cmpi ne, %1, %c0_i32_0 : i32
    scf.if %2 {
      %cst_10 = arith.constant 0.000000e+00 : f32
      %14 = vector.broadcast %cst_10 : f32 to vector<16x32xf32>
      %c0_11 = arith.constant 0 : index
      %c0_12 = arith.constant 0 : index
      %15 = vector.load %arg7[%c0_11, %c0_12] : memref<16x32xf32, #tpu.memory_space<vmem>>, vector<16x32xf32>
      tpu.vector_store %arg7[%c0_11, %c0_12], %14 {strides = array<i32>} : memref<16x32xf32, #tpu.memory_space<vmem>>, vector<16x32xf32>,
    } else {
    }
    %c0 = arith.constant 0 : index
    %c0_1 = arith.constant 0 : index
    %3 = vector.load %arg7[%c0, %c0_1] : memref<16x32xf32, #tpu.memory_space<vmem>>, vector<16x32xf32>
    %c0_2 = arith.constant 0 : index
    %c0_3 = arith.constant 0 : index
    %4 = vector.load %arg3[%c0_2, %c0_3] : memref<16x32xf32, #tpu.memory_space<vmem>>, vector<16x32xf32>
    %5 = arith.truncf %4 : vector<16x32xf32> to vector<16x32xbf16>
    %c0_4 = arith.constant 0 : index
    %c0_5 = arith.constant 0 : index
    %6 = vector.load %arg4[%c0_4, %c0_5] : memref<32x32xf32, #tpu.memory_space<vmem>>, vector<32x32xf32>
    %7 = arith.truncf %6 : vector<32x32xf32> to vector<32x32xbf16>
    %cst = arith.constant dense<0.000000e+00> : vector<16x32xf32>
    %8 = tpu.matmul %5, %7, %cst {dimension_numbers = #tpu.dot_dimension_numbers<[1], [0], [0], [1], [0, 0, 1, 1], [], []>} : vector<16x32xbf16>, vector<32x32xbf16>, vector<16x32xf32> -> vector<16x32xf32>
    %9 = arith.addf %3, %8 : vector<16x32xf32>
    %c0_6 = arith.constant 0 : index
    %c0_7 = arith.constant 0 : index
    %10 = vector.load %arg7[%c0_6, %c0_7] : memref<16x32xf32, #tpu.memory_space<vmem>>, vector<16x32xf32>
    tpu.vector_store %arg7[%c0_6, %c0_7], %9 {strides = array<i32>} : memref<16x32xf32, #tpu.memory_space<vmem>>, vector<16x32xf32>,
    %c0_i32_8 = arith.constant 0 : i32
    %11 = arith.cmpi eq, %arg2, %c0_i32_8 : i32
    %12 = arith.extui %11 : i1 to i32
    %c0_i32_9 = arith.constant 0 : i32
    %13 = arith.cmpi ne, %12, %c0_i32_9 : i32
    scf.if %13 {
      %c0_10 = arith.constant 0 : index
      %c0_11 = arith.constant 0 : index
      %14 = vector.load %arg7[%c0_10, %c0_11] : memref<16x32xf32, #tpu.memory_space<vmem>>, vector<16x32xf32>
      %c0_12 = arith.constant 0 : index
      %c0_13 = arith.constant 0 : index
      %15 = vector.load %arg5[%c0_12, %c0_13] : memref<1x32xf32, #tpu.memory_space<vmem>>, vector<1x32xf32>
      %16 = vector.broadcast %15 : vector<1x32xf32> to vector<16x32xf32>
      %17 = arith.addf %14, %16 : vector<16x32xf32>
      %18 = arith.truncf %17 : vector<16x32xf32> to vector<16x32xbf16>
      %c0_14 = arith.constant 0 : index
      %c0_15 = arith.constant 0 : index
      %19 = vector.load %arg6[%c0_14, %c0_15] : memref<16x32xbf16, #tpu.memory_space<vmem>>, vector<16x32xbf16>
      tpu.vector_store %arg6[%c0_14, %c0_15], %18 {strides = array<i32>} : memref<16x32xbf16, #tpu.memory_space<vmem>>, vector<16x32xbf16>,
    } else {
    }
    return
  }
  func.func @transform_0(%arg0: i32, %arg1: i32, %arg2: i32) -> (i32, i32) {
    %c0_i32 = arith.constant 0 : i32
    return %arg0, %arg2 : i32, i32
  }
  func.func @transform_1(%arg0: i32, %arg1: i32, %arg2: i32) -> (i32, i32) {
    %c0_i32 = arith.constant 0 : i32
    return %arg2, %arg1 : i32, i32
  }
  func.func @transform_2(%arg0: i32, %arg1: i32, %arg2: i32) -> (i32, i32) {
    %c0_i32 = arith.constant 0 : i32
    %c0_i32_0 = arith.constant 0 : i32
    return %c0_i32, %arg1 : i32, i32
  }
  func.func @transform_3(%arg0: i32, %arg1: i32, %arg2: i32) -> (i32, i32) {
    %c0_i32 = arith.constant 0 : i32
    return %arg0, %arg1 : i32, i32
  }
}

module attributes {stable_mosaic.version = 11 : i64} {
  func.func @_matmul_bias_kernel(%arg0: i32, %arg1: i32, %arg2: i32, %arg3: memref<20x32xf32, #tpu.memory_space<vmem>>, %arg4: memref<32x64xf32, #tpu.memory_space<vmem>>, %arg5: memref<1x64xf32, #tpu.memory_space<vmem>>, %arg6: memref<20x64xbf16, #tpu.memory_space<vmem>>, %arg7: memref<20x64xf32, #tpu.memory_space<vmem>>) attributes {dimension_semantics = [#tpu.dimension_semantics<parallel>, #tpu.dimension_semantics<parallel>, #tpu.dimension_semantics<arbitrary>], iteration_bounds = array<i64: 1, 1, 1>, scalar_prefetch = 0 : i64, scratch_operands = 1 : i64, tpu.core_type = #tpu.core_type<tc>, window_params = [{transform_indices = @transform_0, window_bounds = array<i64: 20, 32>}, {transform_indices = @transform_1, window_bounds = array<i64: 32, 64>}, {transform_indices = @transform_2, window_bounds = array<i64: 1, 64>}, {transform_indices = @transform_3, window_bounds = array<i64: 20, 64>}]} {
    %c0_i32 = arith.constant 0 : i32
    %0 = arith.cmpi eq, %arg2, %c0_i32 : i32
    %1 = arith.extui %0 : i1 to i32
    %c0_i32_0 = arith.constant 0 : i32
    %2 = arith.cmpi ne, %1, %c0_i32_0 : i32
    scf.if %2 {
      %cst_10 = arith.constant 0.000000e+00 : f32
      %14 = vector.broadcast %cst_10 : f32 to vector<20x64xf32>
      %c0_11 = arith.constant 0 : index
      %c0_12 = arith.constant 0 : index
      %15 = vector.load %arg7[%c0_11, %c0_12] : memref<20x64xf32, #tpu.memory_space<vmem>>, vector<20x64xf32>
      tpu.vector_store %arg7[%c0_11, %c0_12], %14 {strides = array<i32>} : memref<20x64xf32, #tpu.memory_space<vmem>>, vector<20x64xf32>,
    } else {
    }
    %c0 = arith.constant 0 : index
    %c0_1 = arith.constant 0 : index
    %3 = vector.load %arg7[%c0, %c0_1] : memref<20x64xf32, #tpu.memory_space<vmem>>, vector<20x64xf32>
    %c0_2 = arith.constant 0 : index
    %c0_3 = arith.constant 0 : index
    %4 = vector.load %arg3[%c0_2, %c0_3] : memref<20x32xf32, #tpu.memory_space<vmem>>, vector<20x32xf32>
    %5 = arith.truncf %4 : vector<20x32xf32> to vector<20x32xbf16>
    %c0_4 = arith.constant 0 : index
    %c0_5 = arith.constant 0 : index
    %6 = vector.load %arg4[%c0_4, %c0_5] : memref<32x64xf32, #tpu.memory_space<vmem>>, vector<32x64xf32>
    %7 = arith.truncf %6 : vector<32x64xf32> to vector<32x64xbf16>
    %cst = arith.constant dense<0.000000e+00> : vector<20x64xf32>
    %8 = tpu.matmul %5, %7, %cst {dimension_numbers = #tpu.dot_dimension_numbers<[1], [0], [0], [1], [0, 0, 1, 1], [], []>} : vector<20x32xbf16>, vector<32x64xbf16>, vector<20x64xf32> -> vector<20x64xf32>
    %9 = arith.addf %3, %8 : vector<20x64xf32>
    %c0_6 = arith.constant 0 : index
    %c0_7 = arith.constant 0 : index
    %10 = vector.load %arg7[%c0_6, %c0_7] : memref<20x64xf32, #tpu.memory_space<vmem>>, vector<20x64xf32>
    tpu.vector_store %arg7[%c0_6, %c0_7], %9 {strides = array<i32>} : memref<20x64xf32, #tpu.memory_space<vmem>>, vector<20x64xf32>,
    %c0_i32_8 = arith.constant 0 : i32
    %11 = arith.cmpi eq, %arg2, %c0_i32_8 : i32
    %12 = arith.extui %11 : i1 to i32
    %c0_i32_9 = arith.constant 0 : i32
    %13 = arith.cmpi ne, %12, %c0_i32_9 : i32
    scf.if %13 {
      %c0_10 = arith.constant 0 : index
      %c0_11 = arith.constant 0 : index
      %14 = vector.load %arg7[%c0_10, %c0_11] : memref<20x64xf32, #tpu.memory_space<vmem>>, vector<20x64xf32>
      %c0_12 = arith.constant 0 : index
      %c0_13 = arith.constant 0 : index
      %15 = vector.load %arg5[%c0_12, %c0_13] : memref<1x64xf32, #tpu.memory_space<vmem>>, vector<1x64xf32>
      %16 = vector.broadcast %15 : vector<1x64xf32> to vector<20x64xf32>
      %17 = arith.addf %14, %16 : vector<20x64xf32>
      %18 = arith.truncf %17 : vector<20x64xf32> to vector<20x64xbf16>
      %c0_14 = arith.constant 0 : index
      %c0_15 = arith.constant 0 : index
      %19 = vector.load %arg6[%c0_14, %c0_15] : memref<20x64xbf16, #tpu.memory_space<vmem>>, vector<20x64xbf16>
      tpu.vector_store %arg6[%c0_14, %c0_15], %18 {strides = array<i32>} : memref<20x64xbf16, #tpu.memory_space<vmem>>, vector<20x64xbf16>,
    } else {
    }
    return
  }
  func.func @transform_0(%arg0: i32, %arg1: i32, %arg2: i32) -> (i32, i32) {
    %c0_i32 = arith.constant 0 : i32
    return %arg0, %arg2 : i32, i32
  }
  func.func @transform_1(%arg0: i32, %arg1: i32, %arg2: i32) -> (i32, i32) {
    %c0_i32 = arith.constant 0 : i32
    return %arg2, %arg1 : i32, i32
  }
  func.func @transform_2(%arg0: i32, %arg1: i32, %arg2: i32) -> (i32, i32) {
    %c0_i32 = arith.constant 0 : i32
    %c0_i32_0 = arith.constant 0 : i32
    return %c0_i32, %arg1 : i32, i32
  }
  func.func @transform_3(%arg0: i32, %arg1: i32, %arg2: i32) -> (i32, i32) {
    %c0_i32 = arith.constant 0 : i32
    return %arg0, %arg1 : i32, i32
  }
}

module attributes {stable_mosaic.version = 11 : i64} {
  func.func @_attn_kernel(%arg0: i32, %arg1: memref<1x4x8x8xbf16, #tpu.memory_space<vmem>>, %arg2: memref<1x4x10x8xbf16, #tpu.memory_space<vmem>>, %arg3: memref<1x4x10x8xbf16, #tpu.memory_space<vmem>>, %arg4: memref<1x1x10xf32, #tpu.memory_space<vmem>>, %arg5: memref<1x4x8x8xbf16, #tpu.memory_space<vmem>>) attributes {dimension_semantics = [#tpu.dimension_semantics<parallel>], iteration_bounds = array<i64: 2>, scalar_prefetch = 0 : i64, scratch_operands = 0 : i64, tpu.core_type = #tpu.core_type<tc>, window_params = [{transform_indices = @transform_0, window_bounds = array<i64: 1, 4, 8, 8>}, {transform_indices = @transform_1, window_bounds = array<i64: 1, 4, 10, 8>}, {transform_indices = @transform_2, window_bounds = array<i64: 1, 4, 10, 8>}, {transform_indices = @transform_3, window_bounds = array<i64: 1, 1, 10>}, {transform_indices = @transform_4, window_bounds = array<i64: 1, 4, 8, 8>}]} {
    %c0 = arith.constant 0 : index
    %c0_0 = arith.constant 0 : index
    %c0_1 = arith.constant 0 : index
    %c0_2 = arith.constant 0 : index
    %0 = vector.load %arg1[%c0, %c0_0, %c0_1, %c0_2] : memref<1x4x8x8xbf16, #tpu.memory_space<vmem>>, vector<1x4x8x8xbf16>
    %1 = vector.shape_cast %0 : vector<1x4x8x8xbf16> to vector<4x8x8xbf16>
    %c0_3 = arith.constant 0 : index
    %c0_4 = arith.constant 0 : index
    %c0_5 = arith.constant 0 : index
    %c0_6 = arith.constant 0 : index
    %2 = vector.load %arg2[%c0_3, %c0_4, %c0_5, %c0_6] : memref<1x4x10x8xbf16, #tpu.memory_space<vmem>>, vector<1x4x10x8xbf16>
    %3 = vector.shape_cast %2 : vector<1x4x10x8xbf16> to vector<4x10x8xbf16>
    %c0_7 = arith.constant 0 : index
    %c0_8 = arith.constant 0 : index
    %c0_9 = arith.constant 0 : index
    %c0_10 = arith.constant 0 : index
    %4 = vector.load %arg3[%c0_7, %c0_8, %c0_9, %c0_10] : memref<1x4x10x8xbf16, #tpu.memory_space<vmem>>, vector<1x4x10x8xbf16>
    %5 = vector.shape_cast %4 : vector<1x4x10x8xbf16> to vector<4x10x8xbf16>
    %c0_11 = arith.constant 0 : index
    %c0_12 = arith.constant 0 : index
    %c0_13 = arith.constant 0 : index
    %6 = vector.load %arg4[%c0_11, %c0_12, %c0_13] : memref<1x1x10xf32, #tpu.memory_space<vmem>>, vector<1x1x10xf32>
    %7 = vector.shape_cast %6 : vector<1x1x10xf32> to vector<1x10xf32>
    "tpu.trace_start"() <{level = 10 : i32, message = "hqd,hkd->hqk"}> : () -> ()
    %cst = arith.constant dense<0.000000e+00> : vector<4x8x10xf32>
    %8 = tpu.matmul %1, %3, %cst {dimension_numbers = #tpu.dot_dimension_numbers<[2], [2], [1], [1], [0, 0, 0, 1, 1, 1], [0], [0]>} : vector<4x8x8xbf16>, vector<4x10x8xbf16>, vector<4x8x10xf32> -> vector<4x8x10xf32>
    "tpu.trace_stop"() : () -> ()
    %cst_14 = arith.constant 0.353553385 : f32
    %9 = vector.broadcast %cst_14 : f32 to vector<4x8x10xf32>
    %10 = arith.mulf %8, %9 : vector<4x8x10xf32>
    %11 = vector.shape_cast %7 : vector<1x10xf32> to vector<1x1x10xf32>
    %cst_15 = arith.constant 0.000000e+00 : f32
    %12 = vector.broadcast %cst_15 : f32 to vector<1x1x10xf32>
    %13 = arith.cmpf oeq, %11, %12 : vector<1x1x10xf32>
    %cst_16 = arith.constant -1.000000e+10 : f32
    %14 = vector.shape_cast %13 : vector<1x1x10xi1> to vector<1x1x10xi1>
    %15 = vector.broadcast %14 : vector<1x1x10xi1> to vector<4x8x10xi1>
    %16 = vector.broadcast %cst_16 : f32 to vector<4x8x10xf32>
    %17 = arith.select %15, %16, %10 : vector<4x8x10xi1>, vector<4x8x10xf32>
    %cst_17 = arith.constant dense<0xFF800000> : vector<4x8xf32>
    %18 = vector.multi_reduction <maximumf>, %17, %cst_17 [2] : vector<4x8x10xf32> to vector<4x8xf32>
    %19 = vector.shape_cast %18 : vector<4x8xf32> to vector<4x8x1xf32>
    %20 = vector.broadcast %19 : vector<4x8x1xf32> to vector<4x8x10xf32>
    %21 = arith.subf %17, %20 : vector<4x8x10xf32>
    %22 = math.exp %21 : vector<4x8x10xf32>
    %cst_18 = arith.constant dense<0.000000e+00> : vector<4x8xf32>
    %23 = vector.multi_reduction <add>, %22, %cst_18 [2] : vector<4x8x10xf32> to vector<4x8xf32>
    %24 = vector.shape_cast %23 : vector<4x8xf32> to vector<4x8x1xf32>
    %25 = tpu.reciprocal %24 {approx = true} : vector<4x8x1xf32> -> vector<4x8x1xf32>
    %26 = vector.broadcast %25 : vector<4x8x1xf32> to vector<4x8x10xf32>
    %27 = arith.mulf %22, %26 : vector<4x8x10xf32>
    %28 = arith.truncf %27 : vector<4x8x10xf32> to vector<4x8x10xbf16>
    "tpu.trace_start"() <{level = 10 : i32, message = "hqk,hkd->hqd"}> : () -> ()
    %cst_19 = arith.constant dense<0.000000e+00> : vector<4x8x8xf32>
    %29 = tpu.matmul %28, %5, %cst_19 {dimension_numbers = #tpu.dot_dimension_numbers<[2], [1], [1], [2], [0, 0, 0, 1, 1, 2], [0], [0]>} : vector<4x8x10xbf16>, vector<4x10x8xbf16>, vector<4x8x8xf32> -> vector<4x8x8xf32>
    "tpu.trace_stop"() : () -> ()
    %30 = arith.truncf %29 : vector<4x8x8xf32> to vector<4x8x8xbf16>
    %c0_20 = arith.constant 0 : index
    %c0_21 = arith.constant 0 : index
    %c0_22 = arith.constant 0 : index
    %c0_23 = arith.constant 0 : index
    %31 = vector.load %arg5[%c0_20, %c0_21, %c0_22, %c0_23] : memref<1x4x8x8xbf16, #tpu.memory_space<vmem>>, vector<1x4x8x8xbf16>
    %32 = vector.shape_cast %31 : vector<1x4x8x8xbf16> to vector<4x8x8xbf16>
    %33 = vector.shape_cast %30 : vector<4x8x8xbf16> to vector<1x4x8x8xbf16>
    tpu.vector_store %arg5[%c0_20, %c0_21, %c0_22, %c0_23], %33 {strides = array<i32>} : memref<1x4x8x8xbf16, #tpu.memory_space<vmem>>, vector<1x4x8x8xbf16>,
    return
  }
  func.func @transform_0(%arg0: i32) -> (i32, i32, i32, i32) {
    %c0_i32 = arith.constant 0 : i32
    %c0_i32_0 = arith.constant 0 : i32
    %c0_i32_1 = arith.constant 0 : i32
    %c0_i32_2 = arith.constant 0 : i32
    return %arg0, %c0_i32, %c0_i32_0, %c0_i32_1 : i32, i32, i32, i32
  }
  func.func @transform_1(%arg0: i32) -> (i32, i32, i32, i32) {
    %c0_i32 = arith.constant 0 : i32
    %c0_i32_0 = arith.constant 0 : i32
    %c0_i32_1 = arith.constant 0 : i32
    %c0_i32_2 = arith.constant 0 : i32
    return %arg0, %c0_i32, %c0_i32_0, %c0_i32_1 : i32, i32, i32, i32
  }
  func.func @transform_2(%arg0: i32) -> (i32, i32, i32, i32) {
    %c0_i32 = arith.constant 0 : i32
    %c0_i32_0 = arith.constant 0 : i32
    %c0_i32_1 = arith.constant 0 : i32
    %c0_i32_2 = arith.constant 0 : i32
    return %arg0, %c0_i32, %c0_i32_0, %c0_i32_1 : i32, i32, i32, i32
  }
  func.func @transform_3(%arg0: i32) -> (i32, i32, i32) {
    %c0_i32 = arith.constant 0 : i32
    %c0_i32_0 = arith.constant 0 : i32
    %c0_i32_1 = arith.constant 0 : i32
    return %arg0, %c0_i32, %c0_i32_0 : i32, i32, i32
  }
  func.func @transform_4(%arg0: i32) -> (i32, i32, i32, i32) {
    %c0_i32 = arith.constant 0 : i32
    %c0_i32_0 = arith.constant 0 : i32
    %c0_i32_1 = arith.constant 0 : i32
    %c0_i32_2 = arith.constant 0 : i32
    return %arg0, %c0_i32, %c0_i32_0, %c0_i32_1 : i32, i32, i32, i32
  }
}

module attributes {stable_mosaic.version = 11 : i64} {
  func.func @_ffn_res_ln_kernel(%arg0: i32, %arg1: memref<16x32xf32, #tpu.memory_space<vmem>>, %arg2: memref<32x64xf32, #tpu.memory_space<vmem>>, %arg3: memref<1x64xf32, #tpu.memory_space<vmem>>, %arg4: memref<64x32xf32, #tpu.memory_space<vmem>>, %arg5: memref<1x32xf32, #tpu.memory_space<vmem>>, %arg6: memref<1x32xf32, #tpu.memory_space<vmem>>, %arg7: memref<1x32xf32, #tpu.memory_space<vmem>>, %arg8: memref<16x32xf32, #tpu.memory_space<vmem>>) attributes {dimension_semantics = [#tpu.dimension_semantics<parallel>], iteration_bounds = array<i64: 1>, scalar_prefetch = 0 : i64, scratch_operands = 0 : i64, tpu.core_type = #tpu.core_type<tc>, window_params = [{transform_indices = @transform_0, window_bounds = array<i64: 16, 32>}, {pipeline_mode = #tpu.pipeline_mode<synchronous>, transform_indices = @transform_1, window_bounds = array<i64: 32, 64>}, {pipeline_mode = #tpu.pipeline_mode<synchronous>, transform_indices = @transform_2, window_bounds = array<i64: 1, 64>}, {pipeline_mode = #tpu.pipeline_mode<synchronous>, transform_indices = @transform_3, window_bounds = array<i64: 64, 32>}, {pipeline_mode = #tpu.pipeline_mode<synchronous>, transform_indices = @transform_4, window_bounds = array<i64: 1, 32>}, {pipeline_mode = #tpu.pipeline_mode<synchronous>, transform_indices = @transform_5, window_bounds = array<i64: 1, 32>}, {pipeline_mode = #tpu.pipeline_mode<synchronous>, transform_indices = @transform_6, window_bounds = array<i64: 1, 32>}, {transform_indices = @transform_7, window_bounds = array<i64: 16, 32>}]} {
    %c0 = arith.constant 0 : index
    %c0_0 = arith.constant 0 : index
    %0 = vector.load %arg1[%c0, %c0_0] : memref<16x32xf32, #tpu.memory_space<vmem>>, vector<16x32xf32>
    %1 = arith.truncf %0 : vector<16x32xf32> to vector<16x32xbf16>
    %c0_1 = arith.constant 0 : index
    %c0_2 = arith.constant 0 : index
    %2 = vector.load %arg2[%c0_1, %c0_2] : memref<32x64xf32, #tpu.memory_space<vmem>>, vector<32x64xf32>
    %3 = arith.truncf %2 : vector<32x64xf32> to vector<32x64xbf16>
    %cst = arith.constant dense<0.000000e+00> : vector<16x64xf32>
    %4 = tpu.matmul %1, %3, %cst {dimension_numbers = #tpu.dot_dimension_numbers<[1], [0], [0], [1], [0, 0, 1, 1], [], []>} : vector<16x32xbf16>, vector<32x64xbf16>, vector<16x64xf32> -> vector<16x64xf32>
    %c0_3 = arith.constant 0 : index
    %c0_4 = arith.constant 0 : index
    %5 = vector.load %arg3[%c0_3, %c0_4] : memref<1x64xf32, #tpu.memory_space<vmem>>, vector<1x64xf32>
    %6 = vector.broadcast %5 : vector<1x64xf32> to vector<16x64xf32>
    %7 = arith.addf %4, %6 : vector<16x64xf32>
    %cst_5 = arith.constant 0.000000e+00 : f32
    %8 = vector.broadcast %cst_5 : f32 to vector<16x64xf32>
    %9 = arith.maximumf %7, %8 : vector<16x64xf32>
    %10 = arith.truncf %9 : vector<16x64xf32> to vector<16x64xbf16>
    %c0_6 = arith.constant 0 : index
    %c0_7 = arith.constant 0 : index
    %11 = vector.load %arg4[%c0_6, %c0_7] : memref<64x32xf32, #tpu.memory_space<vmem>>, vector<64x32xf32>
    %12 = arith.truncf %11 : vector<64x32xf32> to vector<64x32xbf16>
    %cst_8 = arith.constant dense<0.000000e+00> : vector<16x32xf32>
    %13 = tpu.matmul %10, %12, %cst_8 {dimension_numbers = #tpu.dot_dimension_numbers<[1], [0], [0], [1], [0, 0, 1, 1], [], []>} : vector<16x64xbf16>, vector<64x32xbf16>, vector<16x32xf32> -> vector<16x32xf32>
    %c0_9 = arith.constant 0 : index
    %c0_10 = arith.constant 0 : index
    %14 = vector.load %arg5[%c0_9, %c0_10] : memref<1x32xf32, #tpu.memory_space<vmem>>, vector<1x32xf32>
    %15 = vector.broadcast %14 : vector<1x32xf32> to vector<16x32xf32>
    %16 = arith.addf %13, %15 : vector<16x32xf32>
    %17 = arith.addf %16, %0 : vector<16x32xf32>
    %cst_11 = arith.constant dense<0.000000e+00> : vector<16xf32>
    %18 = vector.multi_reduction <add>, %17, %cst_11 [1] : vector<16x32xf32> to vector<16xf32>
    %19 = vector.shape_cast %18 : vector<16xf32> to vector<16x1xf32>
    %cst_12 = arith.constant 3.200000e+01 : f32
    %20 = vector.broadcast %cst_12 : f32 to vector<16x1xf32>
    %21 = arith.divf %19, %20 : vector<16x1xf32>
    %22 = vector.broadcast %21 : vector<16x1xf32> to vector<16x32xf32>
    %23 = arith.subf %17, %22 : vector<16x32xf32>
    %24 = arith.mulf %23, %23 : vector<16x32xf32>
    %cst_13 = arith.constant dense<0.000000e+00> : vector<16xf32>
    %25 = vector.multi_reduction <add>, %24, %cst_13 [1] : vector<16x32xf32> to vector<16xf32>
    %26 = vector.shape_cast %25 : vector<16xf32> to vector<16x1xf32>
    %cst_14 = arith.constant 3.200000e+01 : f32
    %27 = vector.broadcast %cst_14 : f32 to vector<16x1xf32>
    %28 = arith.divf %26, %27 : vector<16x1xf32>
    %cst_15 = arith.constant 9.99999974E-6 : f32
    %29 = vector.broadcast %cst_15 : f32 to vector<16x1xf32>
    %30 = arith.addf %28, %29 : vector<16x1xf32>
    %31 = math.rsqrt %30 : vector<16x1xf32>
    %32 = vector.broadcast %31 : vector<16x1xf32> to vector<16x32xf32>
    %33 = arith.mulf %23, %32 : vector<16x32xf32>
    %c0_16 = arith.constant 0 : index
    %c0_17 = arith.constant 0 : index
    %34 = vector.load %arg6[%c0_16, %c0_17] : memref<1x32xf32, #tpu.memory_space<vmem>>, vector<1x32xf32>
    %35 = vector.broadcast %34 : vector<1x32xf32> to vector<16x32xf32>
    %36 = arith.mulf %33, %35 : vector<16x32xf32>
    %c0_18 = arith.constant 0 : index
    %c0_19 = arith.constant 0 : index
    %37 = vector.load %arg7[%c0_18, %c0_19] : memref<1x32xf32, #tpu.memory_space<vmem>>, vector<1x32xf32>
    %38 = vector.broadcast %37 : vector<1x32xf32> to vector<16x32xf32>
    %39 = arith.addf %36, %38 : vector<16x32xf32>
    %c0_20 = arith.constant 0 : index
    %c0_21 = arith.constant 0 : index
    %40 = vector.load %arg8[%c0_20, %c0_21] : memref<16x32xf32, #tpu.memory_space<vmem>>, vector<16x32xf32>
    tpu.vector_store %arg8[%c0_20, %c0_21], %39 {strides = array<i32>} : memref<16x32xf32, #tpu.memory_space<vmem>>, vector<16x32xf32>,
    return
  }
  func.func @transform_0(%arg0: i32) -> (i32, i32) {
    %c0_i32 = arith.constant 0 : i32
    %c0_i32_0 = arith.constant 0 : i32
    return %arg0, %c0_i32 : i32, i32
  }
  func.func @transform_1(%arg0: i32) -> (i32, i32) {
    %c0_i32 = arith.constant 0 : i32
    %c0_i32_0 = arith.constant 0 : i32
    %c0_i32_1 = arith.constant 0 : i32
    return %c0_i32, %c0_i32_0 : i32, i32
  }
  func.func @transform_2(%arg0: i32) -> (i32, i32) {
    %c0_i32 = arith.constant 0 : i32
    %c0_i32_0 = arith.constant 0 : i32
    %c0_i32_1 = arith.constant 0 : i32
    return %c0_i32, %c0_i32_0 : i32, i32
  }
  func.func @transform_3(%arg0: i32) -> (i32, i32) {
    %c0_i32 = arith.constant 0 : i32
    %c0_i32_0 = arith.constant 0 : i32
    %c0_i32_1 = arith.constant 0 : i32
    return %c0_i32, %c0_i32_0 : i32, i32
  }
  func.func @transform_4(%arg0: i32) -> (i32, i32) {
    %c0_i32 = arith.constant 0 : i32
    %c0_i32_0 = arith.constant 0 : i32
    %c0_i32_1 = arith.constant 0 : i32
    return %c0_i32, %c0_i32_0 : i32, i32
  }
  func.func @transform_5(%arg0: i32) -> (i32, i32) {
    %c0_i32 = arith.constant 0 : i32
    %c0_i32_0 = arith.constant 0 : i32
    %c0_i32_1 = arith.constant 0 : i32
    return %c0_i32, %c0_i32_0 : i32, i32
  }
  func.func @transform_6(%arg0: i32) -> (i32, i32) {
    %c0_i32 = arith.constant 0 : i32
    %c0_i32_0 = arith.constant 0 : i32
    %c0_i32_1 = arith.constant 0 : i32
    return %c0_i32, %c0_i32_0 : i32, i32
  }
  func.func @transform_7(%arg0: i32) -> (i32, i32) {
    %c0_i32 = arith.constant 0 : i32
    %c0_i32_0 = arith.constant 0 : i32
    return %arg0, %c0_i32 : i32, i32
  }
}

module attributes {stable_mosaic.version = 11 : i64} {
  func.func @_attn_kernel(%arg0: i32, %arg1: memref<1x4x8x8xbf16, #tpu.memory_space<vmem>>, %arg2: memref<1x4x10x8xbf16, #tpu.memory_space<vmem>>, %arg3: memref<1x4x10x8xbf16, #tpu.memory_space<vmem>>, %arg4: memref<1x1x10xf32, #tpu.memory_space<vmem>>, %arg5: memref<1x4x8x8xbf16, #tpu.memory_space<vmem>>, %arg6: memref<1x4x8x10xf32, #tpu.memory_space<vmem>>) attributes {dimension_semantics = [#tpu.dimension_semantics<parallel>], iteration_bounds = array<i64: 2>, scalar_prefetch = 0 : i64, scratch_operands = 0 : i64, tpu.core_type = #tpu.core_type<tc>, window_params = [{transform_indices = @transform_0, window_bounds = array<i64: 1, 4, 8, 8>}, {transform_indices = @transform_1, window_bounds = array<i64: 1, 4, 10, 8>}, {transform_indices = @transform_2, window_bounds = array<i64: 1, 4, 10, 8>}, {transform_indices = @transform_3, window_bounds = array<i64: 1, 1, 10>}, {transform_indices = @transform_4, window_bounds = array<i64: 1, 4, 8, 8>}, {transform_indices = @transform_5, window_bounds = array<i64: 1, 4, 8, 10>}]} {
    %c0 = arith.constant 0 : index
    %c0_0 = arith.constant 0 : index
    %c0_1 = arith.constant 0 : index
    %c0_2 = arith.constant 0 : index
    %0 = vector.load %arg1[%c0, %c0_0, %c0_1, %c0_2] : memref<1x4x8x8xbf16, #tpu.memory_space<vmem>>, vector<1x4x8x8xbf16>
    %1 = vector.shape_cast %0 : vector<1x4x8x8xbf16> to vector<4x8x8xbf16>
    %c0_3 = arith.constant 0 : index
    %c0_4 = arith.constant 0 : index
    %c0_5 = arith.constant 0 : index
    %c0_6 = arith.constant 0 : index
    %2 = vector.load %arg2[%c0_3, %c0_4, %c0_5, %c0_6] : memref<1x4x10x8xbf16, #tpu.memory_space<vmem>>, vector<1x4x10x8xbf16>
    %3 = vector.shape_cast %2 : vector<1x4x10x8xbf16> to vector<4x10x8xbf16>
    %c0_7 = arith.constant 0 : index
    %c0_8 = arith.constant 0 : index
    %c0_9 = arith.constant 0 : index
    %c0_10 = arith.constant 0 : index
    %4 = vector.load %arg3[%c0_7, %c0_8, %c0_9, %c0_10] : memref<1x4x10x8xbf16, #tpu.memory_space<vmem>>, vector<1x4x10x8xbf16>
    %5 = vector.shape_cast %4 : vector<1x4x10x8xbf16> to vector<4x10x8xbf16>
    %c0_11 = arith.constant 0 : index
    %c0_12 = arith.constant 0 : index
    %c0_13 = arith.constant 0 : index
    %6 = vector.load %arg4[%c0_11, %c0_12, %c0_13] : memref<1x1x10xf32, #tpu.memory_space<vmem>>, vector<1x1x10xf32>
    %7 = vector.shape_cast %6 : vector<1x1x10xf32> to vector<1x10xf32>
    "tpu.trace_start"() <{level = 10 : i32, message = "hqd,hkd->hqk"}> : () -> ()
    %cst = arith.constant dense<0.000000e+00> : vector<4x8x10xf32>
    %8 = tpu.matmul %1, %3, %cst {dimension_numbers = #tpu.dot_dimension_numbers<[2], [2], [1], [1], [0, 0, 0, 1, 1, 1], [0], [0]>} : vector<4x8x8xbf16>, vector<4x10x8xbf16>, vector<4x8x10xf32> -> vector<4x8x10xf32>
    "tpu.trace_stop"() : () -> ()
    %cst_14 = arith.constant 0.353553385 : f32
    %9 = vector.broadcast %cst_14 : f32 to vector<4x8x10xf32>
    %10 = arith.mulf %8, %9 : vector<4x8x10xf32>
    %11 = vector.shape_cast %7 : vector<1x10xf32> to vector<1x1x10xf32>
    %cst_15 = arith.constant 0.000000e+00 : f32
    %12 = vector.broadcast %cst_15 : f32 to vector<1x1x10xf32>
    %13 = arith.cmpf oeq, %11, %12 : vector<1x1x10xf32>
    %cst_16 = arith.constant -1.000000e+10 : f32
    %14 = vector.shape_cast %13 : vector<1x1x10xi1> to vector<1x1x10xi1>
    %15 = vector.broadcast %14 : vector<1x1x10xi1> to vector<4x8x10xi1>
    %16 = vector.broadcast %cst_16 : f32 to vector<4x8x10xf32>
    %17 = arith.select %15, %16, %10 : vector<4x8x10xi1>, vector<4x8x10xf32>
    %cst_17 = arith.constant dense<0xFF800000> : vector<4x8xf32>
    %18 = vector.multi_reduction <maximumf>, %17, %cst_17 [2] : vector<4x8x10xf32> to vector<4x8xf32>
    %19 = vector.shape_cast %18 : vector<4x8xf32> to vector<4x8x1xf32>
    %20 = vector.broadcast %19 : vector<4x8x1xf32> to vector<4x8x10xf32>
    %21 = arith.subf %17, %20 : vector<4x8x10xf32>
    %22 = math.exp %21 : vector<4x8x10xf32>
    %cst_18 = arith.constant dense<0.000000e+00> : vector<4x8xf32>
    %23 = vector.multi_reduction <add>, %22, %cst_18 [2] : vector<4x8x10xf32> to vector<4x8xf32>
    %24 = vector.shape_cast %23 : vector<4x8xf32> to vector<4x8x1xf32>
    %25 = tpu.reciprocal %24 {approx = true} : vector<4x8x1xf32> -> vector<4x8x1xf32>
    %26 = vector.broadcast %25 : vector<4x8x1xf32> to vector<4x8x10xf32>
    %27 = arith.mulf %22, %26 : vector<4x8x10xf32>
    %c0_19 = arith.constant 0 : index
    %c0_20 = arith.constant 0 : index
    %c0_21 = arith.constant 0 : index
    %c0_22 = arith.constant 0 : index
    %28 = vector.load %arg6[%c0_19, %c0_20, %c0_21, %c0_22] : memref<1x4x8x10xf32, #tpu.memory_space<vmem>>, vector<1x4x8x10xf32>
    %29 = vector.shape_cast %28 : vector<1x4x8x10xf32> to vector<4x8x10xf32>
    %30 = vector.shape_cast %27 : vector<4x8x10xf32> to vector<1x4x8x10xf32>
    tpu.vector_store %arg6[%c0_19, %c0_20, %c0_21, %c0_22], %30 {strides = array<i32>} : memref<1x4x8x10xf32, #tpu.memory_space<vmem>>, vector<1x4x8x10xf32>,
    %31 = arith.truncf %27 : vector<4x8x10xf32> to vector<4x8x10xbf16>
    "tpu.trace_start"() <{level = 10 : i32, message = "hqk,hkd->hqd"}> : () -> ()
    %cst_23 = arith.constant dense<0.000000e+00> : vector<4x8x8xf32>
    %32 = tpu.matmul %31, %5, %cst_23 {dimension_numbers = #tpu.dot_dimension_numbers<[2], [1], [1], [2], [0, 0, 0, 1, 1, 2], [0], [0]>} : vector<4x8x10xbf16>, vector<4x10x8xbf16>, vector<4x8x8xf32> -> vector<4x8x8xf32>
    "tpu.trace_stop"() : () -> ()
    %33 = arith.truncf %32 : vector<4x8x8xf32> to vector<4x8x8xbf16>
    %c0_24 = arith.constant 0 : index
    %c0_25 = arith.constant 0 : index
    %c0_26 = arith.constant 0 : index
    %c0_27 = arith.constant 0 : index
    %34 = vector.load %arg5[%c0_24, %c0_25, %c0_26, %c0_27] : memref<1x4x8x8xbf16, #tpu.memory_space<vmem>>, vector<1x4x8x8xbf16>
    %35 = vector.shape_cast %34 : vector<1x4x8x8xbf16> to vector<4x8x8xbf16>
    %36 = vector.shape_cast %33 : vector<4x8x8xbf16> to vector<1x4x8x8xbf16>
    tpu.vector_store %arg5[%c0_24, %c0_25, %c0_26, %c0_27], %36 {strides = array<i32>} : memref<1x4x8x8xbf16, #tpu.memory_space<vmem>>, vector<1x4x8x8xbf16>,
    return
  }
  func.func @transform_0(%arg0: i32) -> (i32, i32, i32, i32) {
    %c0_i32 = arith.constant 0 : i32
    %c0_i32_0 = arith.constant 0 : i32
    %c0_i32_1 = arith.constant 0 : i32
    %c0_i32_2 = arith.constant 0 : i32
    return %arg0, %c0_i32, %c0_i32_0, %c0_i32_1 : i32, i32, i32, i32
  }
  func.func @transform_1(%arg0: i32) -> (i32, i32, i32, i32) {
    %c0_i32 = arith.constant 0 : i32
    %c0_i32_0 = arith.constant 0 : i32
    %c0_i32_1 = arith.constant 0 : i32
    %c0_i32_2 = arith.constant 0 : i32
    return %arg0, %c0_i32, %c0_i32_0, %c0_i32_1 : i32, i32, i32, i32
  }
  func.func @transform_2(%arg0: i32) -> (i32, i32, i32, i32) {
    %c0_i32 = arith.constant 0 : i32
    %c0_i32_0 = arith.constant 0 : i32
    %c0_i32_1 = arith.constant 0 : i32
    %c0_i32_2 = arith.constant 0 : i32
    return %arg0, %c0_i32, %c0_i32_0, %c0_i32_1 : i32, i32, i32, i32
  }
  func.func @transform_3(%arg0: i32) -> (i32, i32, i32) {
    %c0_i32 = arith.constant 0 : i32
    %c0_i32_0 = arith.constant 0 : i32
    %c0_i32_1 = arith.constant 0 : i32
    return %arg0, %c0_i32, %c0_i32_0 : i32, i32, i32
  }
  func.func @transform_4(%arg0: i32) -> (i32, i32, i32, i32) {
    %c0_i32 = arith.constant 0 : i32
    %c0_i32_0 = arith.constant 0 : i32
    %c0_i32_1 = arith.constant 0 : i32
    %c0_i32_2 = arith.constant 0 : i32
    return %arg0, %c0_i32, %c0_i32_0, %c0_i32_1 : i32, i32, i32, i32
  }
  func.func @transform_5(%arg0: i32) -> (i32, i32, i32, i32) {
    %c0_i32 = arith.constant 0 : i32
    %c0_i32_0 = arith.constant 0 : i32
    %c0_i32_1 = arith.constant 0 : i32
    %c0_i32_2 = arith.constant 0 : i32
    return %arg0, %c0_i32, %c0_i32_0, %c0_i32_1 : i32, i32, i32, i32
  }
}

module attributes {stable_mosaic.version = 11 : i64} {
  func.func @_matmul_bias_kernel(%arg0: i32, %arg1: i32, %arg2: i32, %arg3: memref<16x32xf32, #tpu.memory_space<vmem>>, %arg4: memref<32x50xf32, #tpu.memory_space<vmem>>, %arg5: memref<1x50xf32, #tpu.memory_space<vmem>>, %arg6: memref<16x50xf32, #tpu.memory_space<vmem>>, %arg7: memref<16x50xf32, #tpu.memory_space<vmem>>) attributes {dimension_semantics = [#tpu.dimension_semantics<parallel>, #tpu.dimension_semantics<parallel>, #tpu.dimension_semantics<arbitrary>], iteration_bounds = array<i64: 1, 1, 1>, scalar_prefetch = 0 : i64, scratch_operands = 1 : i64, tpu.core_type = #tpu.core_type<tc>, window_params = [{transform_indices = @transform_0, window_bounds = array<i64: 16, 32>}, {transform_indices = @transform_1, window_bounds = array<i64: 32, 50>}, {transform_indices = @transform_2, window_bounds = array<i64: 1, 50>}, {transform_indices = @transform_3, window_bounds = array<i64: 16, 50>}]} {
    %c0_i32 = arith.constant 0 : i32
    %0 = arith.cmpi eq, %arg2, %c0_i32 : i32
    %1 = arith.extui %0 : i1 to i32
    %c0_i32_0 = arith.constant 0 : i32
    %2 = arith.cmpi ne, %1, %c0_i32_0 : i32
    scf.if %2 {
      %cst_10 = arith.constant 0.000000e+00 : f32
      %14 = vector.broadcast %cst_10 : f32 to vector<16x50xf32>
      %c0_11 = arith.constant 0 : index
      %c0_12 = arith.constant 0 : index
      %15 = vector.load %arg7[%c0_11, %c0_12] : memref<16x50xf32, #tpu.memory_space<vmem>>, vector<16x50xf32>
      tpu.vector_store %arg7[%c0_11, %c0_12], %14 {strides = array<i32>} : memref<16x50xf32, #tpu.memory_space<vmem>>, vector<16x50xf32>,
    } else {
    }
    %c0 = arith.constant 0 : index
    %c0_1 = arith.constant 0 : index
    %3 = vector.load %arg7[%c0, %c0_1] : memref<16x50xf32, #tpu.memory_space<vmem>>, vector<16x50xf32>
    %c0_2 = arith.constant 0 : index
    %c0_3 = arith.constant 0 : index
    %4 = vector.load %arg3[%c0_2, %c0_3] : memref<16x32xf32, #tpu.memory_space<vmem>>, vector<16x32xf32>
    %5 = arith.truncf %4 : vector<16x32xf32> to vector<16x32xbf16>
    %c0_4 = arith.constant 0 : index
    %c0_5 = arith.constant 0 : index
    %6 = vector.load %arg4[%c0_4, %c0_5] : memref<32x50xf32, #tpu.memory_space<vmem>>, vector<32x50xf32>
    %7 = arith.truncf %6 : vector<32x50xf32> to vector<32x50xbf16>
    %cst = arith.constant dense<0.000000e+00> : vector<16x50xf32>
    %8 = tpu.matmul %5, %7, %cst {dimension_numbers = #tpu.dot_dimension_numbers<[1], [0], [0], [1], [0, 0, 1, 1], [], []>} : vector<16x32xbf16>, vector<32x50xbf16>, vector<16x50xf32> -> vector<16x50xf32>
    %9 = arith.addf %3, %8 : vector<16x50xf32>
    %c0_6 = arith.constant 0 : index
    %c0_7 = arith.constant 0 : index
    %10 = vector.load %arg7[%c0_6, %c0_7] : memref<16x50xf32, #tpu.memory_space<vmem>>, vector<16x50xf32>
    tpu.vector_store %arg7[%c0_6, %c0_7], %9 {strides = array<i32>} : memref<16x50xf32, #tpu.memory_space<vmem>>, vector<16x50xf32>,
    %c0_i32_8 = arith.constant 0 : i32
    %11 = arith.cmpi eq, %arg2, %c0_i32_8 : i32
    %12 = arith.extui %11 : i1 to i32
    %c0_i32_9 = arith.constant 0 : i32
    %13 = arith.cmpi ne, %12, %c0_i32_9 : i32
    scf.if %13 {
      %c0_10 = arith.constant 0 : index
      %c0_11 = arith.constant 0 : index
      %14 = vector.load %arg7[%c0_10, %c0_11] : memref<16x50xf32, #tpu.memory_space<vmem>>, vector<16x50xf32>
      %c0_12 = arith.constant 0 : index
      %c0_13 = arith.constant 0 : index
      %15 = vector.load %arg5[%c0_12, %c0_13] : memref<1x50xf32, #tpu.memory_space<vmem>>, vector<1x50xf32>
      %16 = vector.broadcast %15 : vector<1x50xf32> to vector<16x50xf32>
      %17 = arith.addf %14, %16 : vector<16x50xf32>
      %c0_14 = arith.constant 0 : index
      %c0_15 = arith.constant 0 : index
      %18 = vector.load %arg6[%c0_14, %c0_15] : memref<16x50xf32, #tpu.memory_space<vmem>>, vector<16x50xf32>
      tpu.vector_store %arg6[%c0_14, %c0_15], %17 {strides = array<i32>} : memref<16x50xf32, #tpu.memory_space<vmem>>, vector<16x50xf32>,
    } else {
    }
    return
  }
  func.func @transform_0(%arg0: i32, %arg1: i32, %arg2: i32) -> (i32, i32) {
    %c0_i32 = arith.constant 0 : i32
    return %arg0, %arg2 : i32, i32
  }
  func.func @transform_1(%arg0: i32, %arg1: i32, %arg2: i32) -> (i32, i32) {
    %c0_i32 = arith.constant 0 : i32
    return %arg2, %arg1 : i32, i32
  }
  func.func @transform_2(%arg0: i32, %arg1: i32, %arg2: i32) -> (i32, i32) {
    %c0_i32 = arith.constant 0 : i32
    %c0_i32_0 = arith.constant 0 : i32
    return %c0_i32, %arg1 : i32, i32
  }
  func.func @transform_3(%arg0: i32, %arg1: i32, %arg2: i32) -> (i32, i32) {
    %c0_i32 = arith.constant 0 : i32
    return %arg0, %arg1 : i32, i32
  }
}

</mosaic_0001>

<bundles_post_ra>
// kernel: decoder_forward.17
= control target key start
LH: loop header
LB: loop body
LE: loop exit
PB: predicated region body
PF: predicated region fallthrough
CT: control target
= control target key end

     0   :  { %vm19_vm0 = vcmask 785408   ;;  %v131_v0 = vmov 0.0   ;;  %vm132_vm1 = vmmov 0   ;;  %vm33_vm2 = vcmask 261120   ;;  %s184_s1 = inlined_call_operand.vmem [shape: f32[32,96], index: 1, kind: input, shape index: {}]   ;;  %s185_s0 = inlined_call_operand.vmem [shape: f32[16,32], index: 0, kind: input, shape index: {}]   ;;  %s186_s2 = inlined_call_operand.vmem [shape: f32[1,96], index: 2, kind: input, shape index: {}]   ;;  %s187_s3 = inlined_call_operand.vmem [shape: bf16[16,96], index: 3, kind: output, shape index: {}]  }
   0x1   :  { %121 = vmatprep.subr.bf16.mxu0 %v131_v0  ;;  %v27_v1 = vld [vmem:[%s184_s1] sm:$0xff]  ;;  %v28_v2 = vld [vmem:[%s184_s1 + $0x8] sm:$0xff]  ;;  %v29_v3 = vld [vmem:[%s184_s1 + $0x10] sm:$0xff]  ;;  %125 = vmatprep.mubr.msk.bf16.mxu0 %vm132_vm1, %v131_v0  ;;  %20 = vst.msk [vmem:[#allocation2] sm:$0xff] %vm19_vm0, %v131_v0  ;;  %vm105_vm3 = vcmask 781312  }
   0x2   :  { %21 = vst.msk [vmem:[#allocation2 + $0x8] sm:$0xff] %vm19_vm0, %v131_v0  ;;  %v31_v4 = vpack.c.bf16 %v28_v2, %v27_v1  ;;  %v30_v5 = vld [vmem:[%s184_s1 + $0x18] sm:$0xff]  ;;  %v24_v7 = vld [vmem:[%s185_s0] sm:$0xff]  ;;  %v25_v8 = vld [vmem:[%s185_s0 + $0x8] sm:$0xff] }
   0x3   :  { %v32_v6 = vpack.c.bf16 %v30_v5, %v29_v3  ;;  %v26_v9 = vpack.c.bf16 %v25_v8, %v24_v7  ;;  %v113_v18 = vld [vmem:[%s186_s2] ss:$0 sm:$0xff] }
   0x4   :  { %122 = vmatpush3.bf16.msra.mxu0 %v31_v4 }
   0x5   :  { %123 = vmatprep.subr.bf16.mxu0 %v131_v0 }
   0x8   :  { %124 = vmatpush3.bf16.msra.mxu0 %v32_v6  ;;  %v22_v10 = vld [vmem:[#allocation2] sm:$0xff] }
   0x9   :  { %v23_v12 = vld [vmem:[#allocation2 + $0x8] sm:$0xff] }
   0xb   :  { %126 = vmatmul.mubr.msk.bf16.vlgmr.msra.gmra.mrb[0].mxu0 %vm33_vm2, %v26_v9 }
  0xde   :  { %v71_v11 = vpop.f32.mrb[0].mxu0 }
  0xdf   :  { %v78_v13 = vadd.f32 %v71_v11, %v22_v10  ;;  %v127_v14 = vpop.f32.mrb[1].mxu0 }
  0xe0   :  { %v74_v15 = vpop.f32.mrb[2].mxu0 }
  0xe1   :  { %81 = vst.msk [vmem:[#allocation2] sm:$0xff] %vm19_vm0, %v78_v13  ;;  %v79_v16 = vadd.f32 %v74_v15, %v23_v12  ;;  %v128_v17 = vpop.f32.mrb[3].mxu0 }
  0xe3   :  { %82 = vst.msk [vmem:[#allocation2 + $0x8] sm:$0xff] %vm19_vm0, %v79_v16 }
  0xe8   :  { %v86_v19 = vld [vmem:[#allocation2] sm:$0xff] }
  0xe9   :  { %v95_v20 = vadd.f32 %v113_v18, %v86_v19 }
  0xea   :  { %v87_v21 = vld [vmem:[#allocation2 + $0x8] sm:$0xff] }
  0xeb   :  { %v116_v22 = vpack.c.bf16 %v95_v20, %v95_v20  ;;  %v96_v23 = vadd.f32 %v113_v18, %v87_v21 }
  0xed   :  { %106 = vst.msk [vmem:[%s187_s3] sm:$0xf] %vm105_vm3, %v116_v22  ;;  %v117_v24 = vpack.c.bf16 %v96_v23, %v96_v23 }
  0xef   :  { %107 = vst.msk [vmem:[%s187_s3 + $0x4] sm:$0xf] %vm105_vm3, %v117_v24 }

// kernel: decoder_forward.19
= control target key start
LH: loop header
LB: loop body
LE: loop exit
PB: predicated region body
PF: predicated region fallthrough
CT: control target
= control target key end

     0   :  { %vm28_vm0 = vcmask 261120   ;;  %v187_v0 = vmov 0.0   ;;  %vm188_vm1 = vmmov 0   ;;  %s271_s1 = inlined_call_operand.vmem [shape: f32[32,32], index: 1, kind: input, shape index: {}]   ;;  %s272_s0 = inlined_call_operand.vmem [shape: bf16[16,32], index: 0, kind: input, shape index: {}]   ;;  %s273_s2 = inlined_call_operand.vmem [shape: f32[1,32], index: 2, kind: input, shape index: {}]   ;;  %s274_s3 = inlined_call_operand.vmem [shape: f32[16,32], index: 3, kind: input, shape index: {}]   ;;  %s275_s4 = inlined_call_operand.vmem [shape: f32[1,32], index: 4, kind: input, shape index: {}]   ;;  %s276_s5 = inlined_call_operand.vmem [shape: f32[1,32], index: 5, kind: input, shape index: {}]   ;;  %s277_s6 = inlined_call_operand.vmem [shape: f32[16,32], index: 6, kind: output, shape index: {}]  }
   0x1   :  { %172 = vmatprep.subr.bf16.mxu0 %v187_v0  ;;  %v35_v1 = vld [vmem:[%s271_s1] sm:$0xff]  ;;  %v36_v2 = vld [vmem:[%s271_s1 + $0x8] sm:$0xff]  ;;  %v37_v3 = vld [vmem:[%s271_s1 + $0x10] sm:$0xff]  ;;  %176 = vmatprep.mubr.msk.bf16.mxu0 %vm188_vm1, %v187_v0  ;;  %29 = vst.msk [vmem:[#allocation2] sm:$0xff] %vm28_vm0, %v187_v0 }
   0x2   :  { %30 = vst.msk [vmem:[#allocation2 + $0x8] sm:$0xff] %vm28_vm0, %v187_v0  ;;  %v39_v4 = vpack.c.bf16 %v36_v2, %v35_v1  ;;  %v38_v5 = vld [vmem:[%s271_s1 + $0x18] sm:$0xff]  ;;  %v182_v7 = vld [vmem:[%s272_s0] sm:$0xff]   ;;  %v110_v21 = vld [vmem:[%s274_s3 + $0x8] sm:$0xff] }
   0x3   :  { %v40_v6 = vpack.c.bf16 %v38_v5, %v37_v3  ;;  %v166_v16 = vld [vmem:[%s273_s2] ss:$0 sm:$0xff] }
   0x4   :  { %173 = vmatpush3.bf16.msra.mxu0 %v39_v4  ;;  %v109_v18 = vld [vmem:[%s274_s3] sm:$0xff] }
   0x5   :  { %174 = vmatprep.subr.bf16.mxu0 %v187_v0  ;;  %v167_v44 = vld [vmem:[%s275_s4] ss:$0 sm:$0xff] }
   0x6   :  { %v168_v46 = vld [vmem:[%s276_s5] ss:$0 sm:$0xff] }
   0x8   :  { %175 = vmatpush3.bf16.msra.mxu0 %v40_v6  ;;  %v31_v8 = vld [vmem:[#allocation2] sm:$0xff] }
   0x9   :  { %v32_v10 = vld [vmem:[#allocation2 + $0x8] sm:$0xff] }
   0xb   :  { %177 = vmatmul.mubr.msk.bf16.vlgmr.msra.gmra.mrb[0].mxu0 %vm28_vm0, %v182_v7 }
  0xde   :  { %v84_v9 = vpop.f32.mrb[0].mxu0 }
  0xdf   :  { %v91_v11 = vadd.f32 %v84_v9, %v31_v8  ;;  %v178_v12 = vpop.f32.mrb[1].mxu0 }
  0xe0   :  { %v87_v13 = vpop.f32.mrb[2].mxu0 }
  0xe1   :  { %93 = vst.msk [vmem:[#allocation2] sm:$0xff] %vm28_vm0, %v91_v11  ;;  %v92_v14 = vadd.f32 %v87_v13, %v32_v10  ;;  %v179_v15 = vpop.f32.mrb[3].mxu0 }
  0xe3   :  { %94 = vst.msk [vmem:[#allocation2 + $0x8] sm:$0xff] %vm28_vm0, %v92_v14 }
  0xe8   :  { %v98_v17 = vld [vmem:[#allocation2] sm:$0xff] }
  0xe9   :  { %v107_v19 = vadd.f32 %v166_v16, %v98_v17 }
  0xea   :  { %v99_v20 = vld [vmem:[#allocation2 + $0x8] sm:$0xff] }
  0xeb   :  { %v111_v22 = vadd.f32 %v109_v18, %v107_v19  ;;  %v108_v23 = vadd.f32 %v166_v16, %v99_v20 }
  0xed   :  { %v113_v24 = vsel %vm28_vm0, %v111_v22, 0.0  ;;  %v112_v25 = vadd.f32 %v110_v21, %v108_v23 }
  0xee   :  { %114 = vadd.xlane.f32.xlu0 %v113_v24 }
  0xef   :  { %v116_v26 = vsel %vm28_vm0, %v112_v25, 0.0 }
  0xf2   :  { %117 = vadd.xlane.f32.xlu0 %v116_v26 }
 0x17b   :  { %v115_v27 = vpop.xlane.xlu0 %114 }
 0x17c   :  { %v120_v28 = vmul.f32 0.03125, %v115_v27 }
 0x17e   :  { %v122_v29 = vsub.f32 %v111_v22, %v120_v28 }
 0x17f   :  { %v118_v30 = vpop.xlane.xlu0 %117 }
 0x180   :  { %v121_v31 = vmul.f32 0.03125, %v118_v30  ;;  %v124_v32 = vmul.f32 %v122_v29, %v122_v29 }
 0x182   :  { %v123_v33 = vsub.f32 %v112_v25, %v121_v31  ;;  %v126_v34 = vsel %vm28_vm0, %v124_v32, 0.0 }
 0x183   :  { %127 = vadd.xlane.f32.xlu1 %v126_v34 }
 0x184   :  { %v125_v35 = vmul.f32 %v123_v33, %v123_v33 }
 0x186   :  { %v129_v36 = vsel %vm28_vm0, %v125_v35, 0.0 }
 0x187   :  { %130 = vadd.xlane.f32.xlu1 %v129_v36 }
 0x210   :  { %v128_v37 = vpop.xlane.xlu1 %127 }
 0x211   :  { %v132_v38 = vmul.f32 0.03125, %v128_v37 }
 0x213   :  { %v134_v39 = vadd.f32 1e-05, %v132_v38 }
 0x214   :  { %v131_v40 = vpop.xlane.xlu1 %130 }
 0x215   :  { %183 = vrsqrt.f32 %v134_v39  ;;  %v133_v41 = vmul.f32 0.03125, %v131_v40 }
 0x217   :  { %v135_v42 = vadd.f32 1e-05, %v133_v41 }
 0x219   :  { %185 = vrsqrt.f32 %v135_v42 }
 0x21f   :  { %v184_v43 = vpop.eup %183 }
 0x220   :  { %v138_v45 = vmul.f32 %v184_v43, %v122_v29 }
 0x222   :  { %v147_v47 = vmul.f32 %v167_v44, %v138_v45 }
 0x223   :  { %v186_v48 = vpop.eup %185 }
 0x224   :  { %v156_v49 = vadd.f32 %v168_v46, %v147_v47  ;;  %v139_v50 = vmul.f32 %v186_v48, %v123_v33 }
 0x226   :  { %158 = vst.msk [vmem:[%s277_s6] sm:$0xff] %vm28_vm0, %v156_v49  ;;  %v148_v51 = vmul.f32 %v167_v44, %v139_v50 }
 0x228   :  { %v157_v52 = vadd.f32 %v168_v46, %v148_v51 }
 0x22a   :  { %159 = vst.msk [vmem:[%s277_s6 + $0x8] sm:$0xff] %vm28_vm0, %v157_v52 }

// kernel: decoder_forward.20
= control target key start
LH: loop header
LB: loop body
LE: loop exit
PB: predicated region body
PF: predicated region fallthrough
CT: control target
= control target key end

     0   :  { %vm19_vm0 = vcmask 261120   ;;  %v130_v0 = vmov 0.0   ;;  %vm131_vm1 = vmmov 0   ;;  %vm104_vm2 = vcmask 257024   ;;  %s184_s1 = inlined_call_operand.vmem [shape: f32[32,32], index: 1, kind: input, shape index: {}]   ;;  %s185_s0 = inlined_call_operand.vmem [shape: f32[16,32], index: 0, kind: input, shape index: {}]   ;;  %s186_s2 = inlined_call_operand.vmem [shape: f32[1,32], index: 2, kind: input, shape index: {}]   ;;  %s187_s3 = inlined_call_operand.vmem [shape: bf16[16,32], index: 3, kind: output, shape index: {}]  }
   0x1   :  { %120 = vmatprep.subr.bf16.mxu0 %v130_v0  ;;  %v27_v1 = vld [vmem:[%s184_s1] sm:$0xff]  ;;  %v28_v2 = vld [vmem:[%s184_s1 + $0x8] sm:$0xff]  ;;  %v29_v3 = vld [vmem:[%s184_s1 + $0x10] sm:$0xff]  ;;  %124 = vmatprep.mubr.msk.bf16.mxu0 %vm131_vm1, %v130_v0  ;;  %20 = vst.msk [vmem:[#allocation2] sm:$0xff] %vm19_vm0, %v130_v0 }
   0x2   :  { %21 = vst.msk [vmem:[#allocation2 + $0x8] sm:$0xff] %vm19_vm0, %v130_v0  ;;  %v31_v4 = vpack.c.bf16 %v28_v2, %v27_v1  ;;  %v30_v5 = vld [vmem:[%s184_s1 + $0x18] sm:$0xff]  ;;  %v24_v7 = vld [vmem:[%s185_s0] sm:$0xff]  ;;  %v25_v8 = vld [vmem:[%s185_s0 + $0x8] sm:$0xff] }
   0x3   :  { %v32_v6 = vpack.c.bf16 %v30_v5, %v29_v3  ;;  %v26_v9 = vpack.c.bf16 %v25_v8, %v24_v7  ;;  %v112_v18 = vld [vmem:[%s186_s2] ss:$0 sm:$0xff] }
   0x4   :  { %121 = vmatpush3.bf16.msra.mxu0 %v31_v4 }
   0x5   :  { %122 = vmatprep.subr.bf16.mxu0 %v130_v0 }
   0x8   :  { %123 = vmatpush3.bf16.msra.mxu0 %v32_v6  ;;  %v22_v10 = vld [vmem:[#allocation2] sm:$0xff] }
   0x9   :  { %v23_v12 = vld [vmem:[#allocation2 + $0x8] sm:$0xff] }
   0xb   :  { %125 = vmatmul.mubr.msk.bf16.vlgmr.msra.gmra.mrb[0].mxu0 %vm19_vm0, %v26_v9 }
  0xde   :  { %v71_v11 = vpop.f32.mrb[0].mxu0 }
  0xdf   :  { %v78_v13 = vadd.f32 %v71_v11, %v22_v10  ;;  %v126_v14 = vpop.f32.mrb[1].mxu0 }
  0xe0   :  { %v74_v15 = vpop.f32.mrb[2].mxu0 }
  0xe1   :  { %80 = vst.msk [vmem:[#allocation2] sm:$0xff] %vm19_vm0, %v78_v13  ;;  %v79_v16 = vadd.f32 %v74_v15, %v23_v12  ;;  %v127_v17 = vpop.f32.mrb[3].mxu0 }
  0xe3   :  { %81 = vst.msk [vmem:[#allocation2 + $0x8] sm:$0xff] %vm19_vm0, %v79_v16 }
  0xe8   :  { %v85_v19 = vld [vmem:[#allocation2] sm:$0xff] }
  0xe9   :  { %v94_v20 = vadd.f32 %v112_v18, %v85_v19 }
  0xea   :  { %v86_v21 = vld [vmem:[#allocation2 + $0x8] sm:$0xff] }
  0xeb   :  { %v115_v22 = vpack.c.bf16 %v94_v20, %v94_v20  ;;  %v95_v23 = vadd.f32 %v112_v18, %v86_v21 }
  0xed   :  { %105 = vst.msk [vmem:[%s187_s3] sm:$0xf] %vm104_vm2, %v115_v22  ;;  %v116_v24 = vpack.c.bf16 %v95_v23, %v95_v23 }
  0xef   :  { %106 = vst.msk [vmem:[%s187_s3 + $0x4] sm:$0xf] %vm104_vm2, %v116_v24 }

// kernel: decoder_forward.18
= control target key start
LH: loop header
LB: loop body
LE: loop exit
PB: predicated region body
PF: predicated region fallthrough
CT: control target
= control target key end

     0   :  { %s951_s15 = smov 0   ;;  %s1039_s0 = inlined_call_operand.vmem [shape: bf16[2,4,8,8], index: 0, kind: input, shape index: {}]   ;;  %s1040_s1 = inlined_call_operand.vmem [shape: bf16[2,4,8,8], index: 1, kind: input, shape index: {}]   ;;  %s1041_s2 = inlined_call_operand.vmem [shape: bf16[2,4,8,8], index: 2, kind: input, shape index: {}]   ;;  %s1042_s3 = inlined_call_operand.vmem [shape: f32[2,8,8], index: 3, kind: input, shape index: {}]   ;;  %s1043_s4 = inlined_call_operand.vmem [shape: bf16[2,4,8,8], index: 4, kind: output, shape index: {}]  }
   0x1 LB: > { %s798_s16 = sadd.s32 4294967295, %s922_s15   ;;  %p802_p0 = scmp.ge.s32.totalorder %s922_s15, 1  ;;  %s922_s15 = sphi %s951_s15, %s14_s15  }
   0x2   : > { %p191_p1 = scmp.lt.s32.totalorder %s922_s15, 3 }
   0x4   : > { %p192_p2 = pnand %p802_p0, %p191_p1 }
   0x5   : > { %p231_p3 = scmp.lt.s32.totalorder (!%p192_p2), %s798_s16, 1  ;;  %v924_v0 = vmov (!%p192_p2), 0.0   ;;  %vm925_vm0 = vmmov (!%p192_p2), 0   ;;  %vm269_vm1 = vcmask (!%p192_p2), 64512   ;;  %vm516_vm3 = vcmask (!%p192_p2), 1043456  }
   0x6   : > { %195 = sbr.rel (%p192_p2) target bundleno = 783 (0x30f), region = 36  ;;  %842 = vmatprep.subr.bf16.mxu0 (!%p192_p2), %v924_v0  ;;  %848 = vmatprep.subr.bf16.mxu1 (!%p192_p2), %v924_v0  ;;  %vm702_vm4 = vcmask (!%p192_p2), 60416  }
   0x7   : > { %844 = vmatprep.mubr.msk.bf16.mxu0 (!%p192_p2), %vm925_vm0, %v924_v0  ;;  %850 = vmatprep.mubr.msk.bf16.mxu1 (!%p192_p2), %vm925_vm0, %v924_v0 }
   0xd   : > { %s1045_s16 = smov (!%p231_p3, %s798_s16), 1 }
   0xe   : > { %s968_s17 = sshll.u32 %s1045_s16, 4  ;;  %s809_s24 = sshll.u32 %s1045_s16, 3 }
   0xf   : > { %s240_s20 = scalar_lea.vmem %s1040_s1, %s968_s17  ;;  %s235_s23 = scalar_lea.vmem %s1039_s0, %s968_s17 }
  0x10   : > { %v260_v1 = vld [vmem:[%s240_s20] sm:$0xf]  ;;  %v261_v2 = vld [vmem:[%s240_s20 + $0x4] sm:$0xf]  ;;  %v262_v5 = vld [vmem:[%s240_s20 + $0x8] sm:$0xf]  ;;  %s249_s27 = scalar_lea.vmem %s1042_s3, %s809_s24  ;;  %s245_s30 = scalar_lea.vmem %s1041_s2, %s968_s17 }
  0x11   : > { %v274_v3 = vsel %vm269_vm1, %v260_v1, 0  ;;  %v320_v4 = vsel %vm269_vm1, %v261_v2, 0  ;;  %v263_v6 = vld [vmem:[%s240_s20 + $0xc] sm:$0xf]  ;;  %v256_v7 = vld [vmem:[%s235_s23] sm:$0xf]  ;;  %s254_s7 = scalar_lea.vmem %s1043_s4, %s968_s17 }
  0x12   : > { %843 = vmatpush3.bf16.xpose.msra.mxu0 %v274_v3  ;;  %849 = vmatpush3.bf16.xpose.msra.mxu1 %v320_v4  ;;  %v257_v8 = vld [vmem:[%s235_s23 + $0x4] sm:$0xf]  ;;  %v366_v9 = vsel %vm269_vm1, %v262_v5, 0  ;;  %v412_v10 = vsel %vm269_vm1, %v263_v6, 0  ;;  %v258_v11 = vld [vmem:[%s235_s23 + $0x8] sm:$0xf] }
  0x13   : > { %854 = vmatprep.subr.bf16.mxu0 %v924_v0  ;;  %860 = vmatprep.subr.bf16.mxu1 %v924_v0  ;;  %v259_v12 = vld [vmem:[%s235_s23 + $0xc] sm:$0xf]  ;;  %v268_v13 = vld [vmem:[%s249_s27] sm:$0xff]  ;;  %v266_v3 = vld [vmem:[%s245_s30 + $0x8] sm:$0xf] }
  0x14   : > { %vm458_vm2 = vcmp.eq.f32.partialorder %v268_v13, 0.0  ;;  %v264_v62 = vld [vmem:[%s245_s30] sm:$0xf]  ;;  %v265_v1 = vld [vmem:[%s245_s30 + $0x4] sm:$0xf]  ;;  %v610_v4 = vsel %vm516_vm3, %v266_v3, 0 }
  0x15   : > { %v518_v63 = vsel %vm516_vm3, %v264_v62, 0  ;;  %v564_v2 = vsel %vm516_vm3, %v265_v1, 0  ;;  %v267_v5 = vld [vmem:[%s245_s30 + $0xc] sm:$0xf] }
  0x16   : > { %v656_v6 = vsel %vm516_vm3, %v267_v5, 0 }
  0x19   : > { %845 = vmatmul.mubr.msk.bf16.vlgmr.msra.gmra.mrb[0].mxu0 %vm269_vm1, %v256_v7  ;;  %851 = vmatmul.mubr.msk.bf16.vlgmr.msra.gmra.mrb[0].mxu1 %vm269_vm1, %v257_v8 }
  0x1a   : > { %855 = vmatpush3.bf16.xpose.msra.mxu0 %v366_v9  ;;  %861 = vmatpush3.bf16.xpose.msra.mxu1 %v412_v10 }
  0x1b   : > { %856 = vmatprep.mubr.msk.bf16.mxu0 %vm925_vm0, %v924_v0  ;;  %862 = vmatprep.mubr.msk.bf16.mxu1 %vm925_vm0, %v924_v0 }
  0x1c   : > { %866 = vmatprep.subr.bf16.mxu0 %v924_v0  ;;  %872 = vmatprep.subr.bf16.mxu1 %v924_v0 }
  0x21   : > { %857 = vmatmul.mubr.msk.bf16.vlgmr.msra.gmra.mrb[4].mxu0 %vm269_vm1, %v258_v11  ;;  %863 = vmatmul.mubr.msk.bf16.vlgmr.msra.gmra.mrb[4].mxu1 %vm269_vm1, %v259_v12 }
  0x22   : > { %868 = vmatprep.mubr.msk.bf16.mxu0 %vm925_vm0, %v924_v0  ;;  %874 = vmatprep.mubr.msk.bf16.mxu1 %vm925_vm0, %v924_v0 }
  0x23   : > { %867 = vmatpush3.bf16.msra.mxu0 %v518_v63  ;;  %873 = vmatpush3.bf16.msra.mxu1 %v564_v2 }
  0x24   : > { %878 = vmatprep.subr.bf16.mxu0 %v924_v0  ;;  %884 = vmatprep.subr.bf16.mxu1 %v924_v0 }
  0xec   : > { %v310_v14 = vpop.f32.mrb[0].mxu0  ;;  %v356_v15 = vpop.f32.mrb[0].mxu1 }
  0xed   : > { %v454_v16 = vmul.f32 0.35355338, %v310_v14  ;;  %v846_v17 = vpop.f32.mrb[1].mxu0  ;;  %v455_v18 = vmul.f32 0.35355338, %v356_v15  ;;  %v852_v19 = vpop.f32.mrb[1].mxu1 }
  0xee   : > { %v313_v20 = vpop.f32.mrb[2].mxu0  ;;  %v359_v21 = vpop.f32.mrb[2].mxu1 }
  0xef   : > { %v847_v22 = vpop.f32.mrb[3].mxu0  ;;  %v853_v23 = vpop.f32.mrb[3].mxu1  ;;  %v461_v24 = vsel %vm458_vm2, -1e+10, %v454_v16  ;;  %v462_v25 = vsel %vm458_vm2, -1e+10, %v455_v18 }
  0xf0   : > { %v465_v26 = vsel %vm269_vm1, %v461_v24, -inf  ;;  %v468_v27 = vsel %vm269_vm1, %v462_v25, -inf }
  0xf1   : > { %466 = vmax.xlane.f32.xlu0 %v465_v26 }
  0xf4   : > { %v402_v28 = vpop.f32.mrb[4].mxu0  ;;  %v448_v29 = vpop.f32.mrb[4].mxu1 }
  0xf5   : > { %v456_v30 = vmul.f32 0.35355338, %v402_v28  ;;  %469 = vmax.xlane.f32.xlu0 %v468_v27  ;;  %v858_v31 = vpop.f32.mrb[5].mxu0  ;;  %v457_v32 = vmul.f32 0.35355338, %v448_v29  ;;  %v864_v33 = vpop.f32.mrb[5].mxu1 }
  0xf6   : > { %v405_v34 = vpop.f32.mrb[6].mxu0  ;;  %v451_v35 = vpop.f32.mrb[6].mxu1 }
  0xf7   : > { %v859_v36 = vpop.f32.mrb[7].mxu0  ;;  %v865_v37 = vpop.f32.mrb[7].mxu1  ;;  %v463_v38 = vsel %vm458_vm2, -1e+10, %v456_v30  ;;  %v464_v39 = vsel %vm458_vm2, -1e+10, %v457_v32 }
  0xf8   : > { %v471_v40 = vsel %vm269_vm1, %v463_v38, -inf  ;;  %v474_v41 = vsel %vm269_vm1, %v464_v39, -inf }
  0xf9   : > { %472 = vmax.xlane.f32.xlu1 %v471_v40 }
  0xfd   : > { %475 = vmax.xlane.f32.xlu1 %v474_v41 }
 0x17e   : > { %v467_v42 = vpop.xlane.xlu0 %466 }
 0x17f   : > { %v477_v43 = vsub.f32 %v461_v24, %v467_v42 }
 0x181   : > { %v481_v44 = vmul.f32 1.442695, %v477_v43 }
 0x182   : > { %v470_v45 = vpop.xlane.xlu0 %469 }
 0x183   : > { %900 = vpow2.f32 %v481_v44  ;;  %v478_v46 = vsub.f32 %v462_v25, %v470_v45 }
 0x185   : > { %v483_v47 = vmul.f32 1.442695, %v478_v46 }
 0x186   : > { %v473_v48 = vpop.xlane.xlu1 %472 }
 0x187   : > { %902 = vpow2.f32 %v483_v47  ;;  %v479_v49 = vsub.f32 %v463_v38, %v473_v48 }
 0x189   : > { %v485_v50 = vmul.f32 1.442695, %v479_v49 }
 0x18a   : > { %v476_v51 = vpop.xlane.xlu1 %475 }
 0x18b   : > { %904 = vpow2.f32 %v485_v50  ;;  %v480_v52 = vsub.f32 %v464_v39, %v476_v51 }
 0x18d   : > { %v901_v53 = vpop.eup %900  ;;  %v487_v54 = vmul.f32 1.442695, %v480_v52 }
 0x18e   : > { %v489_v55 = vsel %vm269_vm1, %v901_v53, 0.0 }
 0x18f   : > { %906 = vpow2.f32 %v487_v54  ;;  %490 = vadd.xlane.f32.xlu0 %v489_v55 }
 0x191   : > { %v903_v56 = vpop.eup %902 }
 0x192   : > { %v492_v57 = vsel %vm269_vm1, %v903_v56, 0.0 }
 0x193   : > { %493 = vadd.xlane.f32.xlu1 %v492_v57 }
 0x195   : > { %v905_v58 = vpop.eup %904 }
 0x196   : > { %v495_v59 = vsel %vm269_vm1, %v905_v58, 0.0 }
 0x197   : > { %496 = vadd.xlane.f32.xlu0 %v495_v59 }
 0x199   : > { %v907_v60 = vpop.eup %906 }
 0x19a   : > { %v498_v61 = vsel %vm269_vm1, %v907_v60, 0.0 }
 0x19b   : > { %499 = vadd.xlane.f32.xlu1 %v498_v61 }
 0x21c   : > { %v491_v7 = vpop.xlane.xlu0 %490 }
 0x21d   : > { %908 = vrcp.f32 %v491_v7 }
 0x220   : > { %v494_v8 = vpop.xlane.xlu1 %493 }
 0x221   : > { %910 = vrcp.f32 %v494_v8 }
 0x224   : > { %v497_v9 = vpop.xlane.xlu0 %496 }
 0x225   : > { %912 = vrcp.f32 %v497_v9 }
 0x227   : > { %v909_v10 = vpop.eup %908 }
 0x228   : > { %v505_v11 = vmul.f32 %v909_v10, %v901_v53  ;;  %v500_v12 = vpop.xlane.xlu1 %499 }
 0x229   : > { %914 = vrcp.f32 %v500_v12 }
 0x22a   : > { %v509_v13 = vpack.c.bf16 %v505_v11, %v505_v11 }
 0x22b   : > { %v911_v14 = vpop.eup %910 }
 0x22c   : > { %v506_v15 = vmul.f32 %v911_v14, %v903_v56  ;;  %869 = vmatmul.mubr.msk.bf16.vlgmr.msra.gmra.mrb[8].mxu0 %vm269_vm1, %v509_v13 }
 0x22d   : > { %879 = vmatpush3.bf16.msra.mxu0 %v610_v4  ;;  %880 = vmatprep.mubr.msk.bf16.mxu0 %vm925_vm0, %v924_v0 }
 0x22e   : > { %v510_v16 = vpack.c.bf16 %v506_v15, %v506_v15 }
 0x22f   : > { %v913_v17 = vpop.eup %912 }
 0x230   : > { %v507_v18 = vmul.f32 %v913_v17, %v905_v58  ;;  %875 = vmatmul.mubr.msk.bf16.vlgmr.msra.gmra.mrb[8].mxu1 %vm269_vm1, %v510_v16 }
 0x231   : > { %885 = vmatpush3.bf16.msra.mxu1 %v656_v6  ;;  %886 = vmatprep.mubr.msk.bf16.mxu1 %vm925_vm0, %v924_v0 }
 0x232   : > { %v511_v19 = vpack.c.bf16 %v507_v18, %v507_v18 }
 0x233   : > { %v915_v20 = vpop.eup %914 }
 0x234   : > { %v508_v21 = vmul.f32 %v915_v20, %v907_v60  ;;  %881 = vmatmul.mubr.msk.bf16.vlgmr.msra.gmra.mrb[12].mxu0 %vm269_vm1, %v511_v19 }
 0x236   : > { %v512_v22 = vpack.c.bf16 %v508_v21, %v508_v21 }
 0x238   : > { %887 = vmatmul.mubr.msk.bf16.vlgmr.msra.gmra.mrb[12].mxu1 %vm269_vm1, %v512_v22 }
 0x2ff   : > { %v554_v23 = vpop.f32.mrb[8].mxu0 }
 0x300   : > { %v698_v24 = vpack.c.bf16 %v554_v23, %v554_v23  ;;  %v870_v25 = vpop.f32.mrb[9].mxu0 }
 0x301   : > { %v557_v26 = vpop.f32.mrb[10].mxu0 }
 0x302   : > { %703 = vst.msk [vmem:[%s254_s7] sm:$0xf] %vm702_vm4, %v698_v24  ;;  %v871_v0 = vpop.f32.mrb[11].mxu0 }
 0x303   : > { %v600_v27 = vpop.f32.mrb[8].mxu1 }
 0x304   : > { %v699_v28 = vpack.c.bf16 %v600_v27, %v600_v27  ;;  %v876_v29 = vpop.f32.mrb[9].mxu1 }
 0x305   : > { %v603_v30 = vpop.f32.mrb[10].mxu1 }
 0x306   : > { %704 = vst.msk [vmem:[%s254_s7 + $0x4] sm:$0xf] %vm702_vm4, %v699_v28  ;;  %v877_v31 = vpop.f32.mrb[11].mxu1 }
 0x307   : > { %v646_v32 = vpop.f32.mrb[12].mxu0 }
 0x308   : > { %v700_v33 = vpack.c.bf16 %v646_v32, %v646_v32  ;;  %v882_v34 = vpop.f32.mrb[13].mxu0 }
 0x309   : > { %v649_v35 = vpop.f32.mrb[14].mxu0 }
 0x30a   : > { %705 = vst.msk [vmem:[%s254_s7 + $0x8] sm:$0xf] %vm702_vm4, %v700_v33  ;;  %v883_v36 = vpop.f32.mrb[15].mxu0 }
 0x30b   : > { %v692_v37 = vpop.f32.mrb[12].mxu1 }
 0x30c   : > { %v701_v38 = vpack.c.bf16 %v692_v37, %v692_v37  ;;  %v888_v39 = vpop.f32.mrb[13].mxu1 }
 0x30d   : > { %v695_v40 = vpop.f32.mrb[14].mxu1 }
 0x30e   : > { %706 = vst.msk [vmem:[%s254_s7 + $0xc] sm:$0xf] %vm702_vm4, %v701_v38  ;;  %v889_v41 = vpop.f32.mrb[15].mxu1 }
 0x30f PF: > { %s14_s15 = sadd.s32 1, %s922_s15  }
 0x310   : > { %p11_p4 = scmp.ge.s32.totalorder %s14_s15, 4  }
 0x312   :  { %13 = sbr.rel (!%p11_p4) target bundleno = 1 (0x1), region = 75 }

// kernel: decoder_forward.21
= control target key start
LH: loop header
LB: loop body
LE: loop exit
PB: predicated region body
PF: predicated region fallthrough
CT: control target
= control target key end

     0   :  { %vm22_vm0 = vcmask 519168   ;;  %v160_v3 = vmov 0.0   ;;  %vm38_vm1 = vcmask 261120   ;;  %vm19_vm2 = vcmask 523264   ;;  %s222_s1 = inlined_call_operand.vmem [shape: f32[32,64], index: 1, kind: input, shape index: {}]   ;;  %s223_s0 = inlined_call_operand.vmem [shape: f32[20,32], index: 0, kind: input, shape index: {}]   ;;  %s224_s2 = inlined_call_operand.vmem [shape: f32[1,64], index: 2, kind: input, shape index: {}]   ;;  %s225_s3 = inlined_call_operand.vmem [shape: bf16[20,64], index: 3, kind: output, shape index: {}]  }
   0x1   :  { %v32_v0 = vld [vmem:[%s222_s1] sm:$0xff]  ;;  %v33_v1 = vld [vmem:[%s222_s1 + $0x8] sm:$0xff]  ;;  %v34_v2 = vld [vmem:[%s222_s1 + $0x10] sm:$0xff]  ;;  %23 = vst.msk [vmem:[#allocation2 + $0x10] sm:$0xf] %vm22_vm0, %v160_v3  ;;  %vm132_vm3 = vcmask 517120  }
   0x2   :  { %v36_v4 = vpack.c.bf16 %v33_v1, %v32_v0  ;;  %v35_v5 = vld [vmem:[%s222_s1 + $0x18] sm:$0xff]  ;;  %v27_v6 = vld [vmem:[%s223_s0] sm:$0xff]  ;;  %v28_v7 = vld [vmem:[%s223_s0 + $0x8] sm:$0xff]  ;;  %20 = vst.msk [vmem:[#allocation2] sm:$0xff] %vm19_vm2, %v160_v3 }
   0x3   :  { %v37_v8 = vpack.c.bf16 %v35_v5, %v34_v2  ;;  %v30_v9 = vpack.c.bf16 %v28_v7, %v27_v6  ;;  %v29_v10 = vld [vmem:[%s223_s0 + $0x10] sm:$0xf]  ;;  %21 = vst.msk [vmem:[#allocation2 + $0x8] sm:$0xff] %vm19_vm2, %v160_v3  ;;  %v140_v22 = vld [vmem:[%s224_s2] ss:$0 sm:$0xff] }
   0x4   :  { %151 = vmatprep.subr.bf16.mxu0 %v36_v4  ;;  %v31_v11 = vpack.c.bf16 %v29_v10, %v29_v10 }
   0x5   :  { %152 = vmatpush3.bf16.msra.mxu0 %v36_v4  ;;  %155 = vmatprep.mubr.msk.bf16.mxu0 %vm38_vm1, %v30_v9 }
   0x6   :  { %153 = vmatprep.subr.bf16.mxu0 %v37_v8 }
   0x8   :  { %v26_v12 = vld [vmem:[#allocation2 + $0x10] sm:$0xf] }
   0x9   :  { %154 = vmatpush3.bf16.msra.mxu0 %v37_v8  ;;  %v24_v13 = vld [vmem:[#allocation2] sm:$0xff] }
   0xa   :  { %v25_v17 = vld [vmem:[#allocation2 + $0x8] sm:$0xff] }
   0xc   :  { %156 = vmatmul.mubr.msk.bf16.vlgmr.msra.gmra.mrb[0].mxu0 %vm38_vm1, %v31_v11 }
  0xdf   :  { %v157_v14 = vpop.f32.mrb[0].mxu0 }
  0xe0   :  { %v95_v15 = vadd.f32 %v157_v14, %v26_v12  ;;  %v79_v16 = vpop.f32.mrb[1].mxu0 }
  0xe1   :  { %v93_v18 = vadd.f32 %v79_v16, %v24_v13  ;;  %v158_v19 = vpop.f32.mrb[2].mxu0 }
  0xe2   :  { %100 = vst.msk [vmem:[#allocation2 + $0x10] sm:$0xf] %vm22_vm0, %v95_v15  ;;  %v82_v20 = vpop.f32.mrb[3].mxu0 }
  0xe3   :  { %97 = vst.msk [vmem:[#allocation2] sm:$0xff] %vm19_vm2, %v93_v18  ;;  %v94_v21 = vadd.f32 %v82_v20, %v25_v17 }
  0xe5   :  { %98 = vst.msk [vmem:[#allocation2 + $0x8] sm:$0xff] %vm19_vm2, %v94_v21 }
  0xe9   :  { %v106_v23 = vld [vmem:[#allocation2 + $0x10] sm:$0xf] }
  0xea   :  { %v116_v24 = vadd.f32 %v140_v22, %v106_v23  ;;  %v104_v25 = vld [vmem:[#allocation2] sm:$0xff] }
  0xeb   :  { %v114_v26 = vadd.f32 %v140_v22, %v104_v25 }
  0xec   :  { %v146_v27 = vpack.c.bf16 %v116_v24, %v116_v24  ;;  %v105_v28 = vld [vmem:[#allocation2 + $0x8] sm:$0xff] }
  0xed   :  { %v144_v29 = vpack.c.bf16 %v114_v26, %v114_v26  ;;  %v115_v30 = vadd.f32 %v140_v22, %v105_v28 }
  0xee   :  { %133 = vst.msk [vmem:[%s225_s3 + $0x8] sm:$0x3] %vm132_vm3, %v146_v27 }
  0xef   :  { %130 = vst.msk [vmem:[%s225_s3] sm:$0xf] %vm22_vm0, %v144_v29  ;;  %v145_v31 = vpack.c.bf16 %v115_v30, %v115_v30 }
  0xf1   :  { %131 = vst.msk [vmem:[%s225_s3 + $0x4] sm:$0xf] %vm22_vm0, %v145_v31 }

// kernel: decoder_forward.24
= control target key start
LH: loop header
LB: loop body
LE: loop exit
PB: predicated region body
PF: predicated region fallthrough
CT: control target
= control target key end

     0   :  { %v248_v0 = vmov 0.0   ;;  %vm249_vm0 = vmmov 0   ;;  %vm43_vm1 = vcmask 261120   ;;  %vm110_vm2 = vcmask 523264   ;;  %s357_s1 = inlined_call_operand.vmem [shape: f32[32,64], index: 1, kind: input, shape index: {}]   ;;  %s358_s3 = inlined_call_operand.vmem [shape: f32[64,32], index: 3, kind: input, shape index: {}]   ;;  %s359_s0 = inlined_call_operand.vmem [shape: f32[16,32], index: 0, kind: input, shape index: {}]   ;;  %s360_s2 = inlined_call_operand.vmem [shape: f32[1,64], index: 2, kind: input, shape index: {}]   ;;  %s361_s4 = inlined_call_operand.vmem [shape: f32[1,32], index: 4, kind: input, shape index: {}]   ;;  %s362_s5 = inlined_call_operand.vmem [shape: f32[1,32], index: 5, kind: input, shape index: {}]   ;;  %s363_s6 = inlined_call_operand.vmem [shape: f32[1,32], index: 6, kind: input, shape index: {}]   ;;  %s364_s7 = inlined_call_operand.vmem [shape: f32[16,32], index: 7, kind: output, shape index: {}]  }
   0x1   :  { %222 = vmatprep.subr.bf16.mxu0 %v248_v0  ;;  %v30_v1 = vld [vmem:[%s357_s1] sm:$0xff]  ;;  %v31_v2 = vld [vmem:[%s357_s1 + $0x8] sm:$0xff]  ;;  %v32_v3 = vld [vmem:[%s357_s1 + $0x10] sm:$0xff]  ;;  %226 = vmatprep.mubr.msk.bf16.mxu0 %vm249_vm0, %v248_v0 }
   0x2   :  { %v34_v4 = vpack.c.bf16 %v31_v2, %v30_v1  ;;  %v33_v5 = vld [vmem:[%s357_s1 + $0x18] sm:$0xff]  ;;  %230 = vmatprep.subr.bf16.mxu1 %v248_v0  ;;  %238 = vmatprep.mubr.msk.bf16.mxu1 %vm249_vm0, %v248_v0  ;;  %v91_v6 = vld [vmem:[%s358_s3] sm:$0xff]  ;;  %v92_v7 = vld [vmem:[%s358_s3 + $0x8] sm:$0xff] }
   0x3   :  { %v93_v8 = vld [vmem:[%s358_s3 + $0x10] sm:$0xff]  ;;  %v35_v9 = vpack.c.bf16 %v33_v5, %v32_v3  ;;  %v27_v10 = vld [vmem:[%s359_s0] sm:$0xff]  ;;  %v28_v11 = vld [vmem:[%s359_s0 + $0x8] sm:$0xff]  ;;  %v99_v12 = vpack.c.bf16 %v92_v7, %v91_v6 }
   0x4   :  { %223 = vmatpush3.bf16.msra.mxu0 %v34_v4  ;;  %v94_v13 = vld [vmem:[%s358_s3 + $0x18] sm:$0xff]  ;;  %v29_v15 = vpack.c.bf16 %v28_v11, %v27_v10  ;;  %v95_v16 = vld [vmem:[%s358_s3 + $0x20] sm:$0xff]  ;;  %v96_v17 = vld [vmem:[%s358_s3 + $0x28] sm:$0xff] }
   0x5   :  { %224 = vmatprep.subr.bf16.mxu0 %v248_v0  ;;  %231 = vmatpush3.bf16.msra.mxu1 %v99_v12  ;;  %v100_v14 = vpack.c.bf16 %v94_v13, %v93_v8  ;;  %v101_v18 = vpack.c.bf16 %v96_v17, %v95_v16  ;;  %v97_v19 = vld [vmem:[%s358_s3 + $0x30] sm:$0xff]  ;;  %v98_v20 = vld [vmem:[%s358_s3 + $0x38] sm:$0xff]  ;;  %v208_v22 = vld [vmem:[%s360_s2] ss:$0 sm:$0xff] }
   0x6   :  { %232 = vmatprep.subr.bf16.mxu1 %v248_v0  ;;  %v102_v21 = vpack.c.bf16 %v98_v20, %v97_v19  ;;  %v210_v32 = vld [vmem:[%s361_s4] ss:$0 sm:$0xff] }
   0x7   :  { %v212_v60 = vld [vmem:[%s362_s5] ss:$0 sm:$0xff] }
   0x8   :  { %225 = vmatpush3.bf16.msra.mxu0 %v35_v9  ;;  %v213_v62 = vld [vmem:[%s363_s6] ss:$0 sm:$0xff] }
   0x9   :  { %233 = vmatpush3.bf16.msra.mxu1 %v100_v14 }
   0xa   :  { %234 = vmatprep.subr.bf16.mxu1 %v248_v0 }
   0xb   :  { %227 = vmatmul.mubr.msk.bf16.vlgmr.msra.gmra.mrb[0].mxu0 %vm43_vm1, %v29_v15 }
   0xd   :  { %235 = vmatpush3.bf16.msra.mxu1 %v101_v18 }
   0xe   :  { %236 = vmatprep.subr.bf16.mxu1 %v248_v0 }
  0x11   :  { %237 = vmatpush3.bf16.msra.mxu1 %v102_v21 }
  0xde   :  { %v81_v23 = vpop.f32.mrb[0].mxu0 }
  0xdf   :  { %v82_v24 = vadd.f32 %v208_v22, %v81_v23  ;;  %v228_v25 = vpop.f32.mrb[1].mxu0 }
  0xe0   :  { %v84_v26 = vpop.f32.mrb[2].mxu0 }
  0xe1   :  { %v85_v27 = vadd.f32 %v208_v22, %v84_v26  ;;  %v229_v28 = vpop.f32.mrb[3].mxu0  ;;  %v88_v29 = vmax.f32 %v82_v24, 0.0 }
  0xe3   :  { %v89_v30 = vmax.f32 %v85_v27, 0.0 }
  0xe5   :  { %v90_v31 = vpack.c.bf16 %v89_v30, %v88_v29 }
  0xe7   :  { %239 = vmatmul.mubr.msk.bf16.vlgmr.msra.gmra.mrb[0].mxu1 %vm110_vm2, %v90_v31 }
 0x1ba   :  { %v148_v33 = vpop.f32.mrb[0].mxu1 }
 0x1bb   :  { %v149_v34 = vadd.f32 %v210_v32, %v148_v33  ;;  %v240_v35 = vpop.f32.mrb[1].mxu1 }
 0x1bc   :  { %v151_v36 = vpop.f32.mrb[2].mxu1 }
 0x1bd   :  { %v152_v37 = vadd.f32 %v210_v32, %v151_v36  ;;  %v241_v38 = vpop.f32.mrb[3].mxu1  ;;  %v155_v39 = vadd.f32 %v149_v34, %v27_v10 }
 0x1bf   :  { %v157_v40 = vsel %vm43_vm1, %v155_v39, 0.0  ;;  %v156_v41 = vadd.f32 %v152_v37, %v28_v11 }
 0x1c0   :  { %158 = vadd.xlane.f32.xlu0 %v157_v40 }
 0x1c1   :  { %v160_v42 = vsel %vm43_vm1, %v156_v41, 0.0 }
 0x1c4   :  { %161 = vadd.xlane.f32.xlu0 %v160_v42 }
 0x24d   :  { %v159_v43 = vpop.xlane.xlu0 %158 }
 0x24e   :  { %v164_v44 = vmul.f32 0.03125, %v159_v43 }
 0x250   :  { %v166_v45 = vsub.f32 %v155_v39, %v164_v44 }
 0x251   :  { %v162_v46 = vpop.xlane.xlu0 %161 }
 0x252   :  { %v165_v47 = vmul.f32 0.03125, %v162_v46  ;;  %v168_v48 = vmul.f32 %v166_v45, %v166_v45 }
 0x254   :  { %v167_v49 = vsub.f32 %v156_v41, %v165_v47  ;;  %v170_v50 = vsel %vm43_vm1, %v168_v48, 0.0 }
 0x255   :  { %171 = vadd.xlane.f32.xlu1 %v170_v50 }
 0x256   :  { %v169_v51 = vmul.f32 %v167_v49, %v167_v49 }
 0x258   :  { %v173_v52 = vsel %vm43_vm1, %v169_v51, 0.0 }
 0x259   :  { %174 = vadd.xlane.f32.xlu1 %v173_v52 }
 0x2e2   :  { %v172_v53 = vpop.xlane.xlu1 %171 }
 0x2e3   :  { %v176_v54 = vmul.f32 0.03125, %v172_v53 }
 0x2e5   :  { %v178_v55 = vadd.f32 1e-05, %v176_v54 }
 0x2e6   :  { %v175_v56 = vpop.xlane.xlu1 %174 }
 0x2e7   :  { %244 = vrsqrt.f32 %v178_v55  ;;  %v177_v57 = vmul.f32 0.03125, %v175_v56 }
 0x2e9   :  { %v179_v58 = vadd.f32 1e-05, %v177_v57 }
 0x2eb   :  { %246 = vrsqrt.f32 %v179_v58 }
 0x2f1   :  { %v245_v59 = vpop.eup %244 }
 0x2f2   :  { %v182_v61 = vmul.f32 %v245_v59, %v166_v45 }
 0x2f4   :  { %v191_v63 = vmul.f32 %v212_v60, %v182_v61 }
 0x2f5   :  { %v247_v0 = vpop.eup %246 }
 0x2f6   :  { %v200_v1 = vadd.f32 %v213_v62, %v191_v63  ;;  %v183_v2 = vmul.f32 %v247_v0, %v167_v49 }
 0x2f8   :  { %202 = vst.msk [vmem:[%s364_s7] sm:$0xff] %vm43_vm1, %v200_v1  ;;  %v192_v3 = vmul.f32 %v212_v60, %v183_v2 }
 0x2fa   :  { %v201_v4 = vadd.f32 %v213_v62, %v192_v3 }
 0x2fc   :  { %203 = vst.msk [vmem:[%s364_s7 + $0x8] sm:$0xff] %vm43_vm1, %v201_v4 }

// kernel: decoder_forward.22
= control target key start
LH: loop header
LB: loop body
LE: loop exit
PB: predicated region body
PF: predicated region fallthrough
CT: control target
= control target key end

     0   :  { %s1015_s15 = smov 0   ;;  %s1112_s0 = inlined_call_operand.vmem [shape: bf16[2,4,8,8], index: 0, kind: input, shape index: {}]   ;;  %s1113_s1 = inlined_call_operand.vmem [shape: bf16[2,4,10,8], index: 1, kind: input, shape index: {}]   ;;  %s1114_s2 = inlined_call_operand.vmem [shape: bf16[2,4,10,8], index: 2, kind: input, shape index: {}]   ;;  %s1115_s3 = inlined_call_operand.vmem [shape: f32[2,1,10], index: 3, kind: input, shape index: {}]   ;;  %s1116_s4 = inlined_call_operand.vmem [shape: bf16[2,4,8,8], index: 4, kind: output, shape index: {}]  }
   0x1 LB: > { %s845_s16 = sadd.s32 4294967295, %s985_s15   ;;  %p849_p0 = scmp.ge.s32.totalorder %s985_s15, 1  ;;  %s985_s15 = sphi %s1015_s15, %s14_s15  }
   0x2   : > { %p190_p1 = scmp.lt.s32.totalorder %s985_s15, 3 }
   0x4   : > { %p191_p2 = pnand %p849_p0, %p190_p1 }
   0x5   : > { %p229_p3 = scmp.lt.s32.totalorder (!%p191_p2), %s845_s16, 1  ;;  %v987_v0 = vmov (!%p191_p2), 0.0   ;;  %vm988_vm0 = vmmov (!%p191_p2), 0   ;;  %vm279_vm1 = vcmask (!%p191_p2), 64512   ;;  %v485_v13 = vlaneseq (!%p191_p2) }
   0x6   : > { %194 = sbr.rel (%p191_p2) target bundleno = 783 (0x30f), region = 36  ;;  %896 = vmatprep.subr.bf16.mxu0 (!%p191_p2), %v987_v0  ;;  %902 = vmatprep.subr.bf16.mxu1 (!%p191_p2), %v987_v0  ;;  %v989_v17 = vmov (!%p191_p2), 0   ;;  %vm494_vm4 = vcmask (!%p191_p2), 80896   ;;  %vm551_vm5 = vcmask (!%p191_p2), 1044480   ;;  %vm752_vm6 = vcmask (!%p191_p2), 60416  }
   0x7   : > { %898 = vmatprep.mubr.msk.bf16.mxu0 (!%p191_p2), %vm988_vm0, %v987_v0  ;;  %904 = vmatprep.mubr.msk.bf16.mxu1 (!%p191_p2), %vm988_vm0, %v987_v0  ;;  %v486_v15 = vshrl.u32 (!%p191_p2), %v485_v13, 7 }
   0x9   : > { %v487_v16 = vsub.s32 (!%p191_p2), 0, %v486_v15 }
   0xd   : > { %s1118_s16 = smov (!%p229_p3, %s845_s16), 1 }
   0xe   : > { %s877_s17 = sshll.u32 %s1118_s16, 5  ;;  %s876_s21 = sshll.u32 %s1118_s16, 4 }
   0xf   : > { %s238_s20 = scalar_lea.vmem %s1113_s1, %s877_s17  ;;  %s233_s24 = scalar_lea.vmem %s1112_s0, %s876_s21 }
  0x10   : > { %v955_v1 = vld [vmem:[%s238_s20] sm:$0x1f]   ;;  %v956_v2 = vld [vmem:[%s238_s20 + $0x8] sm:$0x1f]   ;;  %v957_v5 = vld [vmem:[%s238_s20 + $0x10] sm:$0x1f]   ;;  %s1047_s27 = scalar_lea.vmem %s1114_s2, %s877_s17  ;;  %s246_s30 = scalar_lea.vmem %s1115_s3, %s1118_s16 }
  0x11   : > { %v284_v3 = vsel %vm279_vm1, %v955_v1, 0  ;;  %v335_v4 = vsel %vm279_vm1, %v956_v2, 0  ;;  %v253_v6 = vld [vmem:[%s233_s24] sm:$0xf]  ;;  %v958_v7 = vld [vmem:[%s238_s20 + $0x18] sm:$0x1f]   ;;  %s251_s7 = scalar_lea.vmem %s1116_s4, %s876_s21 }
  0x12   : > { %897 = vmatpush3.bf16.xpose.msra.mxu0 %v284_v3  ;;  %903 = vmatpush3.bf16.xpose.msra.mxu1 %v335_v4  ;;  %v254_v8 = vld [vmem:[%s233_s24 + $0x4] sm:$0xf]  ;;  %v386_v9 = vsel %vm279_vm1, %v957_v5, 0  ;;  %v437_v10 = vsel %vm279_vm1, %v958_v7, 0  ;;  %v255_v11 = vld [vmem:[%s233_s24 + $0x8] sm:$0xf] }
  0x13   : > { %908 = vmatprep.subr.bf16.mxu0 %v987_v0  ;;  %914 = vmatprep.subr.bf16.mxu1 %v987_v0  ;;  %v256_v12 = vld [vmem:[%s233_s24 + $0xc] sm:$0xf]  ;;  %v273_v14 = vld [vmem:[%s246_s30] sm:$0x1] }
  0x14   : > { %vm483_vm2 = vcmp.eq.f32.partialorder %v273_v14, 0.0  ;;  %v959_v5 = vld [vmem:[%s1047_s27] sm:$0x1f]   ;;  %v960_v7 = vld [vmem:[%s1047_s27 + $0x8] sm:$0x1f]  }
  0x15   : > { %v484_v18 = vsel %vm483_vm2, 1, %v989_v17 }
  0x16   : > { %v488_v19 = vrot.slane %v484_v18, %v487_v16  ;;  %v962_v18 = vld [vmem:[%s1047_s27 + $0x18] sm:$0x1f]  }
  0x18   : > { %vm489_vm3 = vcmp.eq.s32.totalorder %v488_v19, 1 }
  0x19   : > { %899 = vmatmul.mubr.msk.bf16.vlgmr.msra.gmra.mrb[0].mxu0 %vm279_vm1, %v253_v6  ;;  %905 = vmatmul.mubr.msk.bf16.vlgmr.msra.gmra.mrb[0].mxu1 %vm279_vm1, %v254_v8  ;;  %v553_v6 = vsel %vm551_vm5, %v959_v5, 0  ;;  %v604_v8 = vsel %vm551_vm5, %v960_v7, 0 }
  0x1a   : > { %909 = vmatpush3.bf16.xpose.msra.mxu0 %v386_v9  ;;  %915 = vmatpush3.bf16.xpose.msra.mxu1 %v437_v10 }
  0x1b   : > { %910 = vmatprep.mubr.msk.bf16.mxu0 %vm988_vm0, %v987_v0  ;;  %916 = vmatprep.mubr.msk.bf16.mxu1 %vm988_vm0, %v987_v0 }
  0x1c   : > { %920 = vmatprep.subr.bf16.mxu0 %v987_v0  ;;  %926 = vmatprep.subr.bf16.mxu1 %v987_v0 }
  0x21   : > { %911 = vmatmul.mubr.msk.bf16.vlgmr.msra.gmra.mrb[4].mxu0 %vm279_vm1, %v255_v11  ;;  %917 = vmatmul.mubr.msk.bf16.vlgmr.msra.gmra.mrb[4].mxu1 %vm279_vm1, %v256_v12  ;;  %v961_v12 = vld [vmem:[%s1047_s27 + $0x10] sm:$0x1f]  }
  0x22   : > { %922 = vmatprep.mubr.msk.bf16.mxu0 %vm988_vm0, %v987_v0  ;;  %928 = vmatprep.mubr.msk.bf16.mxu1 %vm988_vm0, %v987_v0  ;;  %v655_v17 = vsel %vm551_vm5, %v961_v12, 0 }
  0x23   : > { %921 = vmatpush3.bf16.msra.mxu0 %v553_v6  ;;  %927 = vmatpush3.bf16.msra.mxu1 %v604_v8 }
  0x24   : > { %932 = vmatprep.subr.bf16.mxu0 %v987_v0  ;;  %938 = vmatprep.subr.bf16.mxu1 %v987_v0 }
  0xec   : > { %v320_v20 = vpop.f32.mrb[0].mxu0  ;;  %v371_v23 = vpop.f32.mrb[0].mxu1 }
  0xed   : > { %v479_v21 = vmul.f32 0.35355338, %v320_v20  ;;  %v900_v22 = vpop.f32.mrb[1].mxu0  ;;  %v480_v25 = vmul.f32 0.35355338, %v371_v23  ;;  %v906_v26 = vpop.f32.mrb[1].mxu1 }
  0xee   : > { %v323_v24 = vpop.f32.mrb[2].mxu0  ;;  %v374_v28 = vpop.f32.mrb[2].mxu1  ;;  %v706_v22 = vsel %vm551_vm5, %v962_v18, 0 }
  0xef   : > { %v901_v27 = vpop.f32.mrb[3].mxu0  ;;  %v490_v29 = vsel %vm489_vm3, -1e+10, %v479_v21  ;;  %v907_v30 = vpop.f32.mrb[3].mxu1  ;;  %v491_v32 = vsel %vm489_vm3, -1e+10, %v480_v25 }
  0xf0   : > { %v495_v31 = vsel %vm494_vm4, %v490_v29, -inf  ;;  %v498_v33 = vsel %vm494_vm4, %v491_v32, -inf }
  0xf1   : > { %496 = vmax.xlane.f32.xlu0 %v495_v31 }
  0xf4   : > { %v422_v34 = vpop.f32.mrb[4].mxu0  ;;  %v473_v37 = vpop.f32.mrb[4].mxu1 }
  0xf5   : > { %v481_v35 = vmul.f32 0.35355338, %v422_v34  ;;  %499 = vmax.xlane.f32.xlu0 %v498_v33  ;;  %v912_v36 = vpop.f32.mrb[5].mxu0  ;;  %v482_v39 = vmul.f32 0.35355338, %v473_v37  ;;  %v918_v40 = vpop.f32.mrb[5].mxu1 }
  0xf6   : > { %v425_v38 = vpop.f32.mrb[6].mxu0  ;;  %v476_v42 = vpop.f32.mrb[6].mxu1 }
  0xf7   : > { %v913_v41 = vpop.f32.mrb[7].mxu0  ;;  %v492_v43 = vsel %vm489_vm3, -1e+10, %v481_v35  ;;  %v919_v44 = vpop.f32.mrb[7].mxu1  ;;  %v493_v46 = vsel %vm489_vm3, -1e+10, %v482_v39 }
  0xf8   : > { %v501_v45 = vsel %vm494_vm4, %v492_v43, -inf  ;;  %v504_v47 = vsel %vm494_vm4, %v493_v46, -inf }
  0xf9   : > { %502 = vmax.xlane.f32.xlu1 %v501_v45 }
  0xfd   : > { %505 = vmax.xlane.f32.xlu1 %v504_v47 }
 0x17e   : > { %v497_v48 = vpop.xlane.xlu0 %496 }
 0x17f   : > { %v507_v49 = vsub.f32 %v490_v29, %v497_v48 }
 0x181   : > { %v511_v50 = vmul.f32 1.442695, %v507_v49 }
 0x182   : > { %v500_v51 = vpop.xlane.xlu0 %499 }
 0x183   : > { %963 = vpow2.f32 %v511_v50  ;;  %v508_v52 = vsub.f32 %v491_v32, %v500_v51 }
 0x185   : > { %v513_v53 = vmul.f32 1.442695, %v508_v52 }
 0x186   : > { %v503_v54 = vpop.xlane.xlu1 %502 }
 0x187   : > { %965 = vpow2.f32 %v513_v53  ;;  %v509_v55 = vsub.f32 %v492_v43, %v503_v54 }
 0x189   : > { %v515_v56 = vmul.f32 1.442695, %v509_v55 }
 0x18a   : > { %v506_v57 = vpop.xlane.xlu1 %505 }
 0x18b   : > { %967 = vpow2.f32 %v515_v56  ;;  %v510_v58 = vsub.f32 %v493_v46, %v506_v57 }
 0x18d   : > { %v964_v59 = vpop.eup %963  ;;  %v517_v60 = vmul.f32 1.442695, %v510_v58 }
 0x18e   : > { %v519_v61 = vsel %vm494_vm4, %v964_v59, 0.0 }
 0x18f   : > { %969 = vpow2.f32 %v517_v60  ;;  %520 = vadd.xlane.f32.xlu0 %v519_v61 }
 0x191   : > { %v966_v62 = vpop.eup %965 }
 0x192   : > { %v522_v63 = vsel %vm494_vm4, %v966_v62, 0.0 }
 0x193   : > { %523 = vadd.xlane.f32.xlu1 %v522_v63 }
 0x195   : > { %v968_v1 = vpop.eup %967 }
 0x196   : > { %v525_v2 = vsel %vm494_vm4, %v968_v1, 0.0 }
 0x197   : > { %526 = vadd.xlane.f32.xlu0 %v525_v2 }
 0x199   : > { %v970_v3 = vpop.eup %969 }
 0x19a   : > { %v528_v4 = vsel %vm494_vm4, %v970_v3, 0.0 }
 0x19b   : > { %529 = vadd.xlane.f32.xlu1 %v528_v4 }
 0x21c   : > { %v521_v9 = vpop.xlane.xlu0 %520 }
 0x21d   : > { %971 = vrcp.f32 %v521_v9 }
 0x220   : > { %v524_v10 = vpop.xlane.xlu1 %523 }
 0x221   : > { %973 = vrcp.f32 %v524_v10 }
 0x224   : > { %v527_v11 = vpop.xlane.xlu0 %526 }
 0x225   : > { %975 = vrcp.f32 %v527_v11 }
 0x227   : > { %v972_v13 = vpop.eup %971 }
 0x228   : > { %v535_v14 = vmul.f32 %v972_v13, %v964_v59  ;;  %v530_v15 = vpop.xlane.xlu1 %529 }
 0x229   : > { %977 = vrcp.f32 %v530_v15 }
 0x22a   : > { %v539_v16 = vpack.c.bf16 %v535_v14, %v535_v14 }
 0x22b   : > { %v974_v19 = vpop.eup %973 }
 0x22c   : > { %v536_v20 = vmul.f32 %v974_v19, %v966_v62  ;;  %923 = vmatmul.mubr.msk.bf16.vlgmr.msra.gmra.mrb[8].mxu0 %vm494_vm4, %v539_v16 }
 0x22d   : > { %933 = vmatpush3.bf16.msra.mxu0 %v655_v17  ;;  %934 = vmatprep.mubr.msk.bf16.mxu0 %vm988_vm0, %v987_v0 }
 0x22e   : > { %v540_v21 = vpack.c.bf16 %v536_v20, %v536_v20 }
 0x22f   : > { %v976_v23 = vpop.eup %975 }
 0x230   : > { %v537_v24 = vmul.f32 %v976_v23, %v968_v1  ;;  %929 = vmatmul.mubr.msk.bf16.vlgmr.msra.gmra.mrb[8].mxu1 %vm494_vm4, %v540_v21 }
 0x231   : > { %939 = vmatpush3.bf16.msra.mxu1 %v706_v22  ;;  %940 = vmatprep.mubr.msk.bf16.mxu1 %vm988_vm0, %v987_v0 }
 0x232   : > { %v541_v25 = vpack.c.bf16 %v537_v24, %v537_v24 }
 0x233   : > { %v978_v26 = vpop.eup %977 }
 0x234   : > { %v538_v27 = vmul.f32 %v978_v26, %v970_v3  ;;  %935 = vmatmul.mubr.msk.bf16.vlgmr.msra.gmra.mrb[12].mxu0 %vm494_vm4, %v541_v25 }
 0x236   : > { %v542_v28 = vpack.c.bf16 %v538_v27, %v538_v27 }
 0x238   : > { %941 = vmatmul.mubr.msk.bf16.vlgmr.msra.gmra.mrb[12].mxu1 %vm494_vm4, %v542_v28 }
 0x2ff   : > { %v589_v29 = vpop.f32.mrb[8].mxu0 }
 0x300   : > { %v748_v30 = vpack.c.bf16 %v589_v29, %v589_v29  ;;  %v924_v31 = vpop.f32.mrb[9].mxu0 }
 0x301   : > { %v592_v32 = vpop.f32.mrb[10].mxu0 }
 0x302   : > { %753 = vst.msk [vmem:[%s251_s7] sm:$0xf] %vm752_vm6, %v748_v30  ;;  %v925_v0 = vpop.f32.mrb[11].mxu0 }
 0x303   : > { %v640_v33 = vpop.f32.mrb[8].mxu1 }
 0x304   : > { %v749_v34 = vpack.c.bf16 %v640_v33, %v640_v33  ;;  %v930_v35 = vpop.f32.mrb[9].mxu1 }
 0x305   : > { %v643_v36 = vpop.f32.mrb[10].mxu1 }
 0x306   : > { %754 = vst.msk [vmem:[%s251_s7 + $0x4] sm:$0xf] %vm752_vm6, %v749_v34  ;;  %v931_v37 = vpop.f32.mrb[11].mxu1 }
 0x307   : > { %v691_v38 = vpop.f32.mrb[12].mxu0 }
 0x308   : > { %v750_v39 = vpack.c.bf16 %v691_v38, %v691_v38  ;;  %v936_v40 = vpop.f32.mrb[13].mxu0 }
 0x309   : > { %v694_v41 = vpop.f32.mrb[14].mxu0 }
 0x30a   : > { %755 = vst.msk [vmem:[%s251_s7 + $0x8] sm:$0xf] %vm752_vm6, %v750_v39  ;;  %v937_v42 = vpop.f32.mrb[15].mxu0 }
 0x30b   : > { %v742_v43 = vpop.f32.mrb[12].mxu1 }
 0x30c   : > { %v751_v44 = vpack.c.bf16 %v742_v43, %v742_v43  ;;  %v942_v45 = vpop.f32.mrb[13].mxu1 }
 0x30d   : > { %v745_v46 = vpop.f32.mrb[14].mxu1 }
 0x30e   : > { %756 = vst.msk [vmem:[%s251_s7 + $0xc] sm:$0xf] %vm752_vm6, %v751_v44  ;;  %v943_v47 = vpop.f32.mrb[15].mxu1 }
 0x30f PF: > { %s14_s15 = sadd.s32 1, %s985_s15  }
 0x310   : > { %p11_p4 = scmp.ge.s32.totalorder %s14_s15, 4  }
 0x312   :  { %13 = sbr.rel (!%p11_p4) target bundleno = 1 (0x1), region = 75 }

// kernel: decoder_forward.33
= control target key start
LH: loop header
LB: loop body
LE: loop exit
PB: predicated region body
PF: predicated region fallthrough
CT: control target
= control target key end

     0   :  { %v158_v3 = vmov 0.0   ;;  %vm159_vm0 = vmmov 0   ;;  %vm20_vm1 = vcmask 408576   ;;  %s222_s0 = inlined_call_operand.vmem [shape: f32[16,32], index: 0, kind: input, shape index: {}]   ;;  %s223_s1 = inlined_call_operand.vmem [shape: f32[32,50], index: 1, kind: input, shape index: {}]   ;;  %s224_s2 = inlined_call_operand.vmem [shape: f32[1,50], index: 2, kind: input, shape index: {}]   ;;  %s225_s3 = inlined_call_operand.hbm [shape: f32[16,50], index: 3, kind: output, shape index: {}]  }
   0x1   :  { %v28_v0 = vld [vmem:[%s223_s1] sm:$0xff]  ;;  %v29_v1 = vld [vmem:[%s223_s1 + $0x8] sm:$0xff]  ;;  %v30_v2 = vld [vmem:[%s223_s1 + $0x10] sm:$0xff]  ;;  %121 = vmatprep.subr.bf16.mxu0 %v158_v3  ;;  %125 = vmatprep.mubr.msk.bf16.mxu0 %vm159_vm0, %v158_v3  ;;  %21 = vst.msk [vmem:[#allocation2] sm:$0xff] %vm20_vm1, %v158_v3 }
   0x2   :  { %v32_v4 = vpack.c.bf16 %v29_v1, %v28_v0  ;;  %v31_v5 = vld [vmem:[%s223_s1 + $0x18] sm:$0xff]  ;;  %22 = vst.msk [vmem:[#allocation2 + $0x8] sm:$0xff] %vm20_vm1, %v158_v3 }
   0x3   :  { %8 = vsyncpa [#allocation4], 0  ;;  %v33_v6 = vpack.c.bf16 %v31_v5, %v30_v2  ;;  %v25_v7 = vld [vmem:[%s222_s0] sm:$0xff]  ;;  %v26_v8 = vld [vmem:[%s222_s0 + $0x8] sm:$0xff]  ;;  %vm34_vm2 = vcmask 261120   ;;  %s160_s0 = smov [#allocation3]  }
   0x4   :  { %122 = vmatpush3.bf16.msra.mxu0 %v32_v4  ;;  %v27_v9 = vpack.c.bf16 %v26_v8, %v25_v7  ;;  %v117_v18 = vld [vmem:[%s224_s2] ss:$0 sm:$0xff]  ;;  %s105_s25 = sshll.u32 %s160_s0, 4  ;;  %s106_s25 = int_to_ptr.vmem [resolvable:$true] %s105_s25 }
   0x5   :  { %123 = vmatprep.subr.bf16.mxu0 %v158_v3  ;;  %s134_s26 = scalar_lea.vmem %s106_s25, 256  ;;  %p139_p1 = scmp.lt.s32.totalorder %s106_s25, %s106_s25 }
   0x6   :  { %p135_p0 = scmp.ne.s32.totalorder %s106_s25, %s134_s26  ;;  %p140_p2 = scmp.lt.s32.totalorder %s134_s26, %s134_s26 }
   0x8   :  { %124 = vmatpush3.bf16.msra.mxu0 %v33_v6  ;;  %v23_v10 = vld [vmem:[#allocation2] sm:$0xff]  ;;  %p141_p3 = por %p140_p2, %p139_p1 }
   0x9   :  { %v24_v12 = vld [vmem:[#allocation2 + $0x8] sm:$0xff] }
   0xa   :  { %p142_p4 = pnand %p141_p3, %p135_p0 }
   0xb   :  { %126 = vmatmul.mubr.msk.bf16.vlgmr.msra.gmra.mrb[0].mxu0 %vm34_vm2, %v27_v9 }
  0xde   :  { %v72_v11 = vpop.f32.mrb[0].mxu0 }
  0xdf   :  { %v79_v13 = vadd.f32 %v72_v11, %v23_v10  ;;  %v127_v14 = vpop.f32.mrb[1].mxu0 }
  0xe0   :  { %v75_v15 = vpop.f32.mrb[2].mxu0 }
  0xe1   :  { %82 = vst.msk [vmem:[#allocation2] sm:$0xff] %vm20_vm1, %v79_v13  ;;  %v80_v16 = vadd.f32 %v75_v15, %v24_v12  ;;  %v128_v17 = vpop.f32.mrb[3].mxu0 }
  0xe3   :  { %83 = vst.msk [vmem:[#allocation2 + $0x8] sm:$0xff] %vm20_vm1, %v80_v16 }
  0xe8   :  { %v87_v19 = vld [vmem:[#allocation2] sm:$0xff] }
  0xe9   :  { %v96_v20 = vadd.f32 %v117_v18, %v87_v19 }
  0xea   :  { %v88_v21 = vld [vmem:[#allocation2 + $0x8] sm:$0xff] }
  0xeb   :  { %v97_v22 = vadd.f32 %v117_v18, %v88_v21  ;;  %98 = vst.msk [vmem:[#allocation3] sm:$0xff] %vm20_vm1, %v96_v20 }
  0xed   :  { %99 = vst.msk [vmem:[#allocation3 + $0x8] sm:$0xff] %vm20_vm1, %v97_v22 }
  0xee   :  { %145 = shalt.err (!%p142_p4)
}
  0xef   :  { %s146_s28 = scalar_lea.hbm %s225_s3, 256 }
  0xf0   :  { %p147_p5 = scmp.ne.s32.totalorder %s225_s3, %s146_s28  ;;  %p150_p6 = scmp.lt.u32.totalorder %s146_s28, %s225_s3 }
  0xf2   :  { %p152_p7 = pnand %p150_p6, %p147_p5 }
  0xf4   :  { %155 = shalt.err (!%p152_p7)
}
  0xf5   :  { %s161_s6 = smov 128   ;;  %s162_s7 = smov 8  }
  0xf6   :  { %111 = dma.vmem_to_hbm [thread:$0]  %s106_s25, 256, %s225_s3, [#allocation4], %s161_s6, %s161_s6, %s162_s7  }
  0xf7   :  { %156 = dma.done.wait [#allocation4], 256  }
  0xf8   :  { %157 = vsyncadd [#allocation4], 4294967040 }
  0xf9   :  { %115 = vsyncpa [#allocation4], 1 }

// kernel: decoder_forward.30
= control target key start
LH: loop header
LB: loop body
LE: loop exit
PB: predicated region body
PF: predicated region fallthrough
CT: control target
= control target key end

     0   :  { %11 = vsyncpa [#allocation3], 0  ;;  %s1413_s0 = inlined_call_operand.vmem [shape: bf16[2,4,8,8], index: 0, kind: input, shape index: {}]   ;;  %s1414_s1 = inlined_call_operand.vmem [shape: bf16[2,4,10,8], index: 1, kind: input, shape index: {}]   ;;  %s1415_s2 = inlined_call_operand.vmem [shape: bf16[2,4,10,8], index: 2, kind: input, shape index: {}]   ;;  %s1416_s3 = inlined_call_operand.vmem [shape: f32[2,1,10], index: 3, kind: input, shape index: {}]   ;;  %s1417_s4 = inlined_call_operand.vmem [shape: bf16[2,4,8,8], index: 4, kind: output, shape index: {0}]   ;;  %s1418_s5 = inlined_call_operand.hbm [shape: f32[2,4,8,10], index: 5, kind: output, shape index: {1}]  }
   0x1   :  { %13 = vsyncpa [#allocation3 + $0x1], 0  ;;  %s1212_s18 = smov 0   ;;  %s1214_s19 = smov 0  }
   0x2   :  { %s1216_s20 = smov 0   ;;  %s1218_s21 = smov 0  }
   0x3 LB: > { %s1233_s22 = sadd.s32 4294967295, %s1174_s21   ;;  %s941_s23 = sadd.s32 4294967294, %s1174_s21   ;;  %s1174_s21 = sphi %s1218_s21, %s1424_s21   ;;  %s1170_s20 = sphi %s1216_s20, %s1423_s20   ;;  %s1166_s19 = sphi %s1214_s19, %s1422_s19   ;;  %s1162_s18 = sphi %s1212_s18, %s1421_s18  }
   0x4   : > { %s1237_s24 = sadd.s32 1, %s1174_s21   ;;  %s156_s25 = sadd.s32 1, %s1170_s20 }
   0x5   : > { %s153_s26 = ssub.s32 %s1174_s21, %s1237_s24  ;;  %p166_p0 = scmp.ne.s32.totalorder %s1170_s20, %s1166_s19 }
   0x6   : > { %p154_p1 = scmp.eq.s32.totalorder %s153_s26, 0  ;;  %p167_p2 = scmp.eq.s32.totalorder %s1233_s22, 1 }
   0x7   : > { %p172_p3 = scmp.ne.s32.totalorder %s1166_s19, %s1162_s18  ;;  %p173_p4 = scmp.eq.s32.totalorder %s941_s23, 1 }
   0x8   : > { %s1248_s27 = scalar_select %p154_p1, %s1170_s20, %s156_s25  }
   0x9   : > { %p1250_p5 = por %p167_p2, %p166_p0  ;;  %p1254_p6 = por %p173_p4, %p172_p3 }
   0xa   : > { %p944_p7 = scmp.ge.s32.totalorder %s1174_s21, 1  ;;  %p221_p8 = scmp.lt.s32.totalorder %s1174_s21, 3 }
   0xc   : > { %p222_p9 = pnand %p944_p7, %p221_p8 }
   0xd   : > { %p267_p10 = scmp.lt.s32.totalorder (!%p222_p9), %s1233_s22, 1  ;;  %v1176_v0 = vmov (!%p222_p9), 0.0   ;;  %vm1177_vm0 = vmmov (!%p222_p9), 0   ;;  %vm317_vm1 = vcmask (!%p222_p9), 64512   ;;  %v523_v13 = vlaneseq (!%p222_p9)  ;;  %s264_s26 = sand.u32 (!%p222_p9), 1, %s1166_s19  }
   0xe   : > { %225 = sbr.rel (%p222_p9) target bundleno = 792 (0x318), region = 36  ;;  %996 = vmatprep.subr.bf16.mxu0 (!%p222_p9), %v1176_v0  ;;  %1002 = vmatprep.subr.bf16.mxu1 (!%p222_p9), %v1176_v0  ;;  %v1178_v17 = vmov (!%p222_p9), 0   ;;  %vm532_vm4 = vcmask (!%p222_p9), 80896   ;;  %vm593_vm5 = vcmask (!%p222_p9), 1044480   ;;  %s979_s8 = sshll.u32 (!%p222_p9), %s1233_s22, 9 }
   0xf   : > { %998 = vmatprep.mubr.msk.bf16.mxu0 (!%p222_p9), %vm1177_vm0, %v1176_v0  ;;  %1004 = vmatprep.mubr.msk.bf16.mxu1 (!%p222_p9), %vm1177_vm0, %v1176_v0  ;;  %v524_v15 = vshrl.u32 (!%p222_p9), %v523_v13, 7  ;;  %s1363_s14 = scalar_lea.sflag (!%p222_p9), [#allocation3], %s264_s26 }
  0x11   : > { %v525_v16 = vsub.s32 (!%p222_p9), 0, %v524_v15 }
  0x15   : > { %s1264_s30 = scalar_select %p267_p10, %s1233_s22, 1 }
  0x16   : > { %s1179_s22 = smov [#allocation2]  }
  0x17   : > { %s976_s6 = sshll.u32 %s1264_s30, 5  ;;  %s975_s10 = sshll.u32 %s1264_s30, 4 }
  0x18   : > { %s276_s9 = scalar_lea.vmem %s1414_s1, %s976_s6  ;;  %s271_s13 = scalar_lea.vmem %s1413_s0, %s975_s10 }
  0x19   : > { %v1088_v1 = vld [vmem:[%s276_s9] sm:$0x1f]   ;;  %v1089_v2 = vld [vmem:[%s276_s9 + $0x8] sm:$0x1f]   ;;  %v1090_v5 = vld [vmem:[%s276_s9 + $0x10] sm:$0x1f]   ;;  %s1286_s16 = scalar_lea.vmem %s1415_s2, %s976_s6  ;;  %s284_s25 = scalar_lea.vmem %s1416_s3, %s1264_s30 }
  0x1a   : > { %v322_v3 = vsel %vm317_vm1, %v1088_v1, 0  ;;  %v373_v4 = vsel %vm317_vm1, %v1089_v2, 0  ;;  %v291_v6 = vld [vmem:[%s271_s13] sm:$0xf]  ;;  %v1091_v7 = vld [vmem:[%s276_s9 + $0x18] sm:$0x1f]  }
  0x1b   : > { %997 = vmatpush3.bf16.xpose.msra.mxu0 %v322_v3  ;;  %1003 = vmatpush3.bf16.xpose.msra.mxu1 %v373_v4  ;;  %v292_v8 = vld [vmem:[%s271_s13 + $0x4] sm:$0xf]  ;;  %v424_v9 = vsel %vm317_vm1, %v1090_v5, 0  ;;  %v475_v10 = vsel %vm317_vm1, %v1091_v7, 0  ;;  %v293_v11 = vld [vmem:[%s271_s13 + $0x8] sm:$0xf] }
  0x1c   : > { %1008 = vmatprep.subr.bf16.mxu0 %v1176_v0  ;;  %1014 = vmatprep.subr.bf16.mxu1 %v1176_v0  ;;  %v294_v12 = vld [vmem:[%s271_s13 + $0xc] sm:$0xf]  ;;  %v311_v14 = vld [vmem:[%s284_s25] sm:$0x1]  ;;  %s945_s6 = sshll.u32 %s264_s26, 5  ;;  %s1357_s13 = scalar_lea.hbm %s1418_s5, %s979_s8 }
  0x1d   : > { %vm521_vm2 = vcmp.eq.f32.partialorder %v311_v14, 0.0  ;;  %v1092_v5 = vld [vmem:[%s1286_s16] sm:$0x1f]   ;;  %v1093_v7 = vld [vmem:[%s1286_s16 + $0x8] sm:$0x1f]   ;;  %s1331_s7 = scalar_lea.vmem [#allocation2], %s945_s6 }
  0x1e   : > { %v522_v18 = vsel %vm521_vm2, 1, %v1178_v17  ;;  %s821_s9 = sshll.u32 %s1331_s7, 4  ;;  %s1359_s9 = int_to_ptr.vmem [resolvable:$true] %s821_s9 }
  0x1f   : > { %v526_v19 = vrot.slane %v522_v18, %v525_v16  ;;  %v1095_v18 = vld [vmem:[%s1286_s16 + $0x18] sm:$0x1f]   ;;  %s1112_s15 = scalar_lea.vmem %s1359_s9, 512 }
  0x20   : > { %p1113_p11 = scmp.ne.s32.totalorder %s1359_s9, %s1112_s15 }
  0x21   : > { %vm527_vm3 = vcmp.eq.s32.totalorder %v526_v19, 1 }
  0x22   : > { %999 = vmatmul.mubr.msk.bf16.vlgmr.msra.gmra.mrb[0].mxu0 %vm317_vm1, %v291_v6  ;;  %1005 = vmatmul.mubr.msk.bf16.vlgmr.msra.gmra.mrb[0].mxu1 %vm317_vm1, %v292_v8  ;;  %v595_v6 = vsel %vm593_vm5, %v1092_v5, 0  ;;  %v646_v8 = vsel %vm593_vm5, %v1093_v7, 0  ;;  %p1114_p12 = pnand %p1113_p11, %p1250_p5 }
  0x23   : > { %1009 = vmatpush3.bf16.xpose.msra.mxu0 %v424_v9  ;;  %1015 = vmatpush3.bf16.xpose.msra.mxu1 %v475_v10 }
  0x24   : > { %1010 = vmatprep.mubr.msk.bf16.mxu0 %vm1177_vm0, %v1176_v0  ;;  %1016 = vmatprep.mubr.msk.bf16.mxu1 %vm1177_vm0, %v1176_v0  ;;  %p1115_p13 = pneg %p1114_p12 }
  0x25   : > { %1020 = vmatprep.subr.bf16.mxu0 %v1176_v0  ;;  %1026 = vmatprep.subr.bf16.mxu1 %v1176_v0 }
  0x2a   : > { %1011 = vmatmul.mubr.msk.bf16.vlgmr.msra.gmra.mrb[4].mxu0 %vm317_vm1, %v293_v11  ;;  %1017 = vmatmul.mubr.msk.bf16.vlgmr.msra.gmra.mrb[4].mxu1 %vm317_vm1, %v294_v12  ;;  %v1094_v12 = vld [vmem:[%s1286_s16 + $0x10] sm:$0x1f]   ;;  %s1116_s16 = sshll.u32 %s1179_s22, 4  ;;  %s1117_s16 = int_to_ptr.vmem [resolvable:$false] %s1116_s16 }
  0x2b   : > { %1022 = vmatprep.mubr.msk.bf16.mxu0 %vm1177_vm0, %v1176_v0  ;;  %1028 = vmatprep.mubr.msk.bf16.mxu1 %vm1177_vm0, %v1176_v0  ;;  %v697_v17 = vsel %vm593_vm5, %v1094_v12, 0  ;;  %s1118_s17 = scalar_lea.vmem %s1117_s16, 1024  ;;  %p1119_p0 = scmp.lt.s32.totalorder %s1359_s9, %s1117_s16 }
  0x2c   : > { %1021 = vmatpush3.bf16.msra.mxu0 %v595_v6  ;;  %1027 = vmatpush3.bf16.msra.mxu1 %v646_v8  ;;  %p1120_p1 = scmp.lt.s32.totalorder %s1118_s17, %s1112_s15 }
  0x2d   : > { %1032 = vmatprep.subr.bf16.mxu0 %v1176_v0  ;;  %1038 = vmatprep.subr.bf16.mxu1 %v1176_v0 }
  0x2e   : > { %p1121_p2 = por %p1120_p1, %p1119_p0 }
  0x30   : > { %p1122_p3 = pnand %p1121_p2, %p1115_p13 }
  0xf5   : > { %v358_v20 = vpop.f32.mrb[0].mxu0  ;;  %v409_v23 = vpop.f32.mrb[0].mxu1 }
  0xf6   : > { %v517_v21 = vmul.f32 0.35355338, %v358_v20  ;;  %v1000_v22 = vpop.f32.mrb[1].mxu0  ;;  %v518_v25 = vmul.f32 0.35355338, %v409_v23  ;;  %v1006_v26 = vpop.f32.mrb[1].mxu1 }
  0xf7   : > { %v361_v24 = vpop.f32.mrb[2].mxu0  ;;  %v412_v28 = vpop.f32.mrb[2].mxu1  ;;  %v748_v22 = vsel %vm593_vm5, %v1095_v18, 0 }
  0xf8   : > { %v1001_v27 = vpop.f32.mrb[3].mxu0  ;;  %v528_v29 = vsel %vm527_vm3, -1e+10, %v517_v21  ;;  %v1007_v30 = vpop.f32.mrb[3].mxu1  ;;  %v529_v32 = vsel %vm527_vm3, -1e+10, %v518_v25 }
  0xf9   : > { %v533_v31 = vsel %vm532_vm4, %v528_v29, -inf  ;;  %v536_v33 = vsel %vm532_vm4, %v529_v32, -inf }
  0xfa   : > { %534 = vmax.xlane.f32.xlu0 %v533_v31 }
  0xfd   : > { %v460_v34 = vpop.f32.mrb[4].mxu0  ;;  %v511_v37 = vpop.f32.mrb[4].mxu1 }
  0xfe   : > { %v519_v35 = vmul.f32 0.35355338, %v460_v34  ;;  %537 = vmax.xlane.f32.xlu0 %v536_v33  ;;  %v1012_v36 = vpop.f32.mrb[5].mxu0  ;;  %v520_v39 = vmul.f32 0.35355338, %v511_v37  ;;  %v1018_v40 = vpop.f32.mrb[5].mxu1 }
  0xff   : > { %v463_v38 = vpop.f32.mrb[6].mxu0  ;;  %v514_v42 = vpop.f32.mrb[6].mxu1 }
 0x100   : > { %v1013_v41 = vpop.f32.mrb[7].mxu0  ;;  %v530_v43 = vsel %vm527_vm3, -1e+10, %v519_v35  ;;  %v1019_v44 = vpop.f32.mrb[7].mxu1  ;;  %v531_v46 = vsel %vm527_vm3, -1e+10, %v520_v39 }
 0x101   : > { %v539_v45 = vsel %vm532_vm4, %v530_v43, -inf  ;;  %v542_v47 = vsel %vm532_vm4, %v531_v46, -inf }
 0x102   : > { %540 = vmax.xlane.f32.xlu1 %v539_v45 }
 0x106   : > { %543 = vmax.xlane.f32.xlu1 %v542_v47 }
 0x187   : > { %v535_v48 = vpop.xlane.xlu0 %534 }
 0x188   : > { %v545_v49 = vsub.f32 %v528_v29, %v535_v48 }
 0x18a   : > { %v549_v50 = vmul.f32 1.442695, %v545_v49 }
 0x18b   : > { %v538_v51 = vpop.xlane.xlu0 %537 }
 0x18c   : > { %1096 = vpow2.f32 %v549_v50  ;;  %v546_v52 = vsub.f32 %v529_v32, %v538_v51 }
 0x18e   : > { %v551_v53 = vmul.f32 1.442695, %v546_v52 }
 0x18f   : > { %v541_v54 = vpop.xlane.xlu1 %540 }
 0x190   : > { %1098 = vpow2.f32 %v551_v53  ;;  %v547_v55 = vsub.f32 %v530_v43, %v541_v54 }
 0x192   : > { %v553_v56 = vmul.f32 1.442695, %v547_v55 }
 0x193   : > { %v544_v57 = vpop.xlane.xlu1 %543 }
 0x194   : > { %1100 = vpow2.f32 %v553_v56  ;;  %v548_v58 = vsub.f32 %v531_v46, %v544_v57 }
 0x196   : > { %v1097_v59 = vpop.eup %1096  ;;  %v555_v60 = vmul.f32 1.442695, %v548_v58 }
 0x197   : > { %v557_v61 = vsel %vm532_vm4, %v1097_v59, 0.0 }
 0x198   : > { %1102 = vpow2.f32 %v555_v60  ;;  %558 = vadd.xlane.f32.xlu0 %v557_v61 }
 0x19a   : > { %v1099_v62 = vpop.eup %1098 }
 0x19b   : > { %v560_v63 = vsel %vm532_vm4, %v1099_v62, 0.0 }
 0x19c   : > { %561 = vadd.xlane.f32.xlu1 %v560_v63 }
 0x19e   : > { %v1101_v1 = vpop.eup %1100 }
 0x19f   : > { %v563_v2 = vsel %vm532_vm4, %v1101_v1, 0.0 }
 0x1a0   : > { %564 = vadd.xlane.f32.xlu0 %v563_v2 }
 0x1a2   : > { %v1103_v3 = vpop.eup %1102 }
 0x1a3   : > { %v566_v4 = vsel %vm532_vm4, %v1103_v3, 0.0 }
 0x1a4   : > { %567 = vadd.xlane.f32.xlu1 %v566_v4 }
 0x225   : > { %v559_v9 = vpop.xlane.xlu0 %558 }
 0x226   : > { %1104 = vrcp.f32 %v559_v9 }
 0x229   : > { %v562_v10 = vpop.xlane.xlu1 %561 }
 0x22a   : > { %1106 = vrcp.f32 %v562_v10 }
 0x22d   : > { %v565_v11 = vpop.xlane.xlu0 %564 }
 0x22e   : > { %1108 = vrcp.f32 %v565_v11 }
 0x230   : > { %v1105_v13 = vpop.eup %1104 }
 0x231   : > { %v573_v14 = vmul.f32 %v1105_v13, %v1097_v59  ;;  %v568_v15 = vpop.xlane.xlu1 %567 }
 0x232   : > { %1110 = vrcp.f32 %v568_v15 }
 0x233   : > { %577 = vst.msk [vmem:[%s1331_s7] sm:$0xff] %vm532_vm4, %v573_v14  ;;  %v581_v16 = vpack.c.bf16 %v573_v14, %v573_v14 }
 0x234   : > { %v1107_v19 = vpop.eup %1106 }
 0x235   : > { %v574_v20 = vmul.f32 %v1107_v19, %v1099_v62  ;;  %1023 = vmatmul.mubr.msk.bf16.vlgmr.msra.gmra.mrb[8].mxu0 %vm532_vm4, %v581_v16 }
 0x236   : > { %1033 = vmatpush3.bf16.msra.mxu0 %v697_v17  ;;  %1034 = vmatprep.mubr.msk.bf16.mxu0 %vm1177_vm0, %v1176_v0 }
 0x237   : > { %578 = vst.msk [vmem:[%s1331_s7 + $0x8] sm:$0xff] %vm532_vm4, %v574_v20  ;;  %v582_v21 = vpack.c.bf16 %v574_v20, %v574_v20 }
 0x238   : > { %v1109_v23 = vpop.eup %1108 }
 0x239   : > { %v575_v24 = vmul.f32 %v1109_v23, %v1101_v1  ;;  %1029 = vmatmul.mubr.msk.bf16.vlgmr.msra.gmra.mrb[8].mxu1 %vm532_vm4, %v582_v21 }
 0x23a   : > { %1039 = vmatpush3.bf16.msra.mxu1 %v748_v22  ;;  %1040 = vmatprep.mubr.msk.bf16.mxu1 %vm1177_vm0, %v1176_v0 }
 0x23b   : > { %579 = vst.msk [vmem:[%s1331_s7 + $0x10] sm:$0xff] %vm532_vm4, %v575_v24  ;;  %v583_v25 = vpack.c.bf16 %v575_v24, %v575_v24 }
 0x23c   : > { %v1111_v26 = vpop.eup %1110 }
 0x23d   : > { %v576_v27 = vmul.f32 %v1111_v26, %v1103_v3  ;;  %1035 = vmatmul.mubr.msk.bf16.vlgmr.msra.gmra.mrb[12].mxu0 %vm532_vm4, %v583_v25 }
 0x23f   : > { %580 = vst.msk [vmem:[%s1331_s7 + $0x18] sm:$0xff] %vm532_vm4, %v576_v27  ;;  %v584_v28 = vpack.c.bf16 %v576_v27, %v576_v27 }
 0x241   : > { %1041 = vmatmul.mubr.msk.bf16.vlgmr.msra.gmra.mrb[12].mxu1 %vm532_vm4, %v584_v28 }
 0x242   : > { %1125 = shalt.err (!%p1122_p3)
}
 0x243   : > { %s1126_s23 = scalar_lea.hbm %s1357_s13, 512  ;;  %s1130_s6 = scalar_lea.hbm %s1418_s5, 1024 }
 0x244   : > { %p1127_p4 = scmp.ne.s32.totalorder %s1357_s13, %s1126_s23  ;;  %p1131_p9 = scmp.lt.u32.totalorder %s1357_s13, %s1418_s5 }
 0x245   : > { %p1132_p10 = scmp.lt.u32.totalorder %s1130_s6, %s1126_s23  ;;  %p1134_p12 = scmp.lt.u32.totalorder %s1126_s23, %s1357_s13 }
 0x246   : > { %p1128_p7 = pnand %p1127_p4, %p1250_p5 }
 0x247   : > { %p1133_p11 = por %p1132_p10, %p1131_p9 }
 0x248   : > { %p1129_p8 = pneg %p1128_p7 }
 0x249   : > { %p1135_p13 = por %p1134_p12, %p1133_p11 }
 0x24b   : > { %p1136_p0 = pnand %p1135_p13, %p1129_p8 }
 0x24d   : > { %1139 = shalt.err (!%p1136_p0)
}
 0x24e   : > { %s1180_s11 = smov 128   ;;  %s1181_s12 = smov 8   ;;  %vm794_vm6 = vcmask 60416  }
 0x24f   : > { %1044 = dma.vmem_to_hbm [thread:$0]  (%p1250_p5), %s1359_s9, 512, %s1357_s13, %s1363_s14, %s1180_s11, %s1180_s11, %s1181_s12  }
 0x250   : > { %s289_s16 = scalar_lea.vmem %s1417_s4, %s975_s10 }
 0x308   : > { %v631_v0 = vpop.f32.mrb[8].mxu0 }
 0x309   : > { %v790_v29 = vpack.c.bf16 %v631_v0, %v631_v0  ;;  %v1024_v30 = vpop.f32.mrb[9].mxu0 }
 0x30a   : > { %v634_v31 = vpop.f32.mrb[10].mxu0 }
 0x30b   : > { %795 = vst.msk [vmem:[%s289_s16] sm:$0xf] %vm794_vm6, %v790_v29  ;;  %v1025_v32 = vpop.f32.mrb[11].mxu0 }
 0x30c   : > { %v682_v33 = vpop.f32.mrb[8].mxu1 }
 0x30d   : > { %v791_v34 = vpack.c.bf16 %v682_v33, %v682_v33  ;;  %v1030_v35 = vpop.f32.mrb[9].mxu1 }
 0x30e   : > { %v685_v36 = vpop.f32.mrb[10].mxu1 }
 0x30f   : > { %796 = vst.msk [vmem:[%s289_s16 + $0x4] sm:$0xf] %vm794_vm6, %v791_v34  ;;  %v1031_v37 = vpop.f32.mrb[11].mxu1 }
 0x310   : > { %v733_v38 = vpop.f32.mrb[12].mxu0 }
 0x311   : > { %v792_v39 = vpack.c.bf16 %v733_v38, %v733_v38  ;;  %v1036_v40 = vpop.f32.mrb[13].mxu0 }
 0x312   : > { %v736_v41 = vpop.f32.mrb[14].mxu0 }
 0x313   : > { %797 = vst.msk [vmem:[%s289_s16 + $0x8] sm:$0xf] %vm794_vm6, %v792_v39  ;;  %v1037_v42 = vpop.f32.mrb[15].mxu0 }
 0x314   : > { %v784_v43 = vpop.f32.mrb[12].mxu1 }
 0x315   : > { %v793_v44 = vpack.c.bf16 %v784_v43, %v784_v43  ;;  %v1042_v45 = vpop.f32.mrb[13].mxu1 }
 0x316   : > { %v787_v46 = vpop.f32.mrb[14].mxu1 }
 0x317   : > { %798 = vst.msk [vmem:[%s289_s16 + $0xc] sm:$0xf] %vm794_vm6, %v793_v44  ;;  %v1043_v47 = vpop.f32.mrb[15].mxu1 }
 0x318 PF: > { %p1050_p5 = scmp.ge.s32.totalorder %s1174_s21, 2  ;;  %s844_s28 = sand.u32 1, %s1162_s18  }
 0x319   : > { %s845_s30 = scalar_lea.sflag [#allocation3], %s844_s28 }
 0x31a   : > { %p1047_p1 = pnand %p1050_p5, %p1254_p6 }
 0x31c   : > { %1157 = dma.done.wait (!%p1047_p1), %s845_s30, 512  }
 0x31d   : > { %1159 = vsyncadd (!%p1047_p1), %s845_s30, 4294966784  ;;  %p16_p2 = scmp.ge.s32.totalorder %s1237_s24, 4   ;;  %s1421_s18 = smov %s1166_s19 }
 0x31e   : > { %s1422_s19 = smov %s1170_s20  ;;  %s1423_s20 = smov %s1248_s27 }
 0x31f   : > { %s1424_s21 = smov %s1237_s24  ;;  %18 = sbr.rel (!%p16_p2) target bundleno = 3 (0x3), region = 92 }
 0x326   :  { %850 = vsyncpa [#allocation3], 1 }
 0x327   :  { %852 = vsyncpa [#allocation3 + $0x1], 1 }

</bundles_post_ra>
